<compile_context>
chip_gen: v5e
topology: v5e:2x2
jax: 0.10.0
libtpu: 0.0.40
codegen_flags: <defaults>
</compile_context>

<pallas_src>
import math
from functools import partial

import jax
import jax.numpy as jnp
from jax import lax
from jax.experimental import pallas as pl
from jax.experimental.pallas import tpu as pltpu

LN_EPS = 1e-5
BN_EPS = 1e-5
F32 = jnp.float32
BF16 = jnp.bfloat16


# ----------------------------------------------------------------------------
# shared in-kernel helpers
# ----------------------------------------------------------------------------
def _layer_norm(x, g, b):
    mu = jnp.mean(x, axis=-1, keepdims=True)
    xc = x - mu
    var = jnp.mean(xc * xc, axis=-1, keepdims=True)
    return xc * lax.rsqrt(var + LN_EPS) * g + b


def _swish(x):
    return x * jax.nn.sigmoid(x)


def _linear(a, w_ref, bias):
    # bf16 MXU operands, f32 accumulation, f32 bias add
    return jnp.dot(a.astype(BF16), w_ref[...], preferred_element_type=F32) + bias


# ----------------------------------------------------------------------------
# stage 1: FFN1 (half-step residual) + attention LayerNorm + Q/K/V projections
# grid = (B, T//Tq), fully row-local
# ----------------------------------------------------------------------------
def _stage1_kernel(x_ref, vec_ref, b1_ref,
                   w1_ref, w2_ref, wq_ref, wk_ref, wv_ref,
                   res1_ref, q_ref, k_ref, v_ref):
    # vec rows: 0 ln1_g, 1 ln1_b, 2 ff1_b2, 3 lna_g, 4 lna_b, 5 bq, 6 bk, 7 bv
    row = lambda i: vec_ref[i:i + 1, :]
    x = x_ref[0].astype(F32)                         # (Tq, D)

    xn = _layer_norm(x, row(0), row(1))
    h = _swish(_linear(xn, w1_ref, b1_ref[...]))
    res1 = x + 0.5 * _linear(h, w2_ref, row(2))
    res1_ref[0] = res1

    xa = _layer_norm(res1, row(3), row(4)).astype(BF16)
    q_ref[0] = (jnp.dot(xa, wq_ref[...], preferred_element_type=F32) + row(5)).astype(BF16)
    k_ref[0] = (jnp.dot(xa, wk_ref[...], preferred_element_type=F32) + row(6)).astype(BF16)
    v_ref[0] = (jnp.dot(xa, wv_ref[...], preferred_element_type=F32) + row(7)).astype(BF16)


# ----------------------------------------------------------------------------
# stage 2: relative-position multi-head self-attention, Wo fused per head
# grid = (B, T//Tq); K/V and the per-tile pe window are full-T resident
# ----------------------------------------------------------------------------
def _stage2_kernel(res1_ref, q_ref, k_ref, v_ref, pe_ref, vec_ref, wo_ref,
                   out_ref, *, n_heads, exp_bf16):
    # vec rows: 0 bo, 1 pos_bias_u, 2 pos_bias_v (heads contiguous in lanes)
    Tq = q_ref.shape[1]
    T = k_ref.shape[1]
    D = q_ref.shape[2]
    dk = D // n_heads
    row = lambda i: vec_ref[i:i + 1, :]

    q = q_ref[0].astype(F32)
    q_u = (q + row(1)).astype(BF16)
    q_v = (q + row(2)).astype(BF16)
    k = k_ref[0]                                     # (T, D) bf16
    v = v_ref[0]                                     # (T, D) bf16
    pe = pe_ref[0]                                   # (Pw, D) bf16, per-tile window
    inv_sdk = 1.0 / math.sqrt(dk)
    exp_dt = BF16 if exp_bf16 else F32               # bf16 EUP only on v6e/v7x

    # residual + wo bias added once; per-head context folded through Wo so only one
    # head's (Tq, T)/(Tq, Pw) intermediates are live at a time (no lane concat).
    # TODO(synk): dk<128 head slices still cost XLU relayouts; head-pair lane packing
    # would remove them but needs a different weight layout.
    acc = res1_ref[0] + row(0)
    for hd in range(n_heads):
        sl = slice(hd * dk, (hd + 1) * dk)
        # content term (q+u) k^T -> (Tq, T)
        ac = lax.dot_general(q_u[:, sl], k[:, sl], (((1,), (1,)), ((), ())),
                             preferred_element_type=F32)
        # position term (q+v) pe_win^T -> (Tq, Pw); pe_win is pre-shifted per query
        # tile so the rel-shift below is a *static* strided roll + static lane slice:
        #   bd[i, j] = bd_full_global[q0+i, (T-1) + j - (q0+i)]
        bd_full = lax.dot_general(q_v[:, sl], pe[:, sl], (((1,), (1,)), ((), ())),
                                  preferred_element_type=F32)
        r1 = pltpu.roll(bd_full, 1, 1, stride=1, stride_axis=0)
        bd = r1[:, Tq:Tq + T]
        scores = (ac + bd) * inv_sdk
        m = jnp.max(scores, axis=-1, keepdims=True)
        e = jnp.exp((scores - m).astype(exp_dt)).astype(F32)
        att = e * pl.reciprocal(jnp.sum(e, axis=-1, keepdims=True), approx=True)
        ctx_h = jnp.dot(att.astype(BF16), v[:, sl], preferred_element_type=F32)
        acc = acc + jnp.dot(ctx_h.astype(BF16), wo_ref[sl, :],
                            preferred_element_type=F32)
    out_ref[0] = acc


# ----------------------------------------------------------------------------
# stage 3: conv module (halo'd) + FFN2 (half-step residual) + output LayerNorm
# grid = (B, T//Tq); residual tile + 2*pad halo fetched by manual DMA
# ----------------------------------------------------------------------------
def _stage3_kernel(res2pad_ref, vec_ref, bpw1_ref, b3_ref,
                   wpw1_ref, wdw_ref, wpw2_ref, w3_ref, w4_ref,
                   out_ref, halo_buf, dma_sem,
                   *, kernel_size, t_len, conv_bf16):
    # vec rows: 0 lnc_g, 1 lnc_b, 2 bdw_fold, 3 pw2_b, 4 ln2_g, 5 ln2_b,
    #           6 ff2_b2, 7 lno_g, 8 lno_b
    Tq = out_ref.shape[1]
    D = out_ref.shape[2]
    pad = (kernel_size - 1) // 2
    rows_h = Tq + 2 * pad
    row = lambda i: vec_ref[i:i + 1, :]

    b = pl.program_id(0)
    q0 = pl.multiple_of(pl.program_id(1) * Tq, 8)

    # halo DMA: rows [q0, q0 + Tq + 2*pad) of the zero-padded residual (in padded
    # coordinates), i.e. original rows [q0 - pad, q0 + Tq + pad)
    cp = pltpu.make_async_copy(res2pad_ref.at[b, pl.ds(q0, rows_h), :],
                               halo_buf, dma_sem)
    cp.start()
    cp.wait()

    halo = halo_buf[...]                             # (Tq + 2*pad, D) f32
    res2 = halo[pad:pad + Tq, :]

    # --- convolution module: LN -> pointwise1 -> GLU -> depthwise(+BN folded)
    #     -> swish -> pointwise2 ------------------------------------------------
    xc = _layer_norm(halo, row(0), row(1))
    pw1 = _linear(xc, wpw1_ref, bpw1_ref[...])       # (rows_h, 2D)
    glu = pw1[:, :D] * jax.nn.sigmoid(pw1[:, D:])
    # zero GLU rows that fall outside the sequence (single select, no per-tap masks)
    g_row = lax.broadcasted_iota(jnp.int32, (rows_h, 1), 0) + (q0 - pad)
    glu = jnp.where((g_row >= 0) & (g_row < t_len), glu, 0.0)

    conv_dt = BF16 if conv_bf16 else F32             # bf16 VALU taps on v6e/v7x only
    glu_c = glu.astype(conv_dt)
    wdw = wdw_ref[...].astype(conv_dt)               # (K, D), BatchNorm pre-folded
    acc = (glu_c[0:Tq, :] * wdw[0:1, :]).astype(F32)         # init from first tap
    for kk in range(1, kernel_size):
        acc = acc + glu_c[kk:kk + Tq, :] * wdw[kk:kk + 1, :]  # f32 accumulation
    acc = acc + row(2)                               # folded conv-bias / BN affine
    res3 = res2 + _linear(_swish(acc), wpw2_ref, row(3))

    # --- feed-forward 2 (half-step residual) + output LayerNorm ----------------
    xn2 = _layer_norm(res3, row(4), row(5))
    h2 = _swish(_linear(xn2, w3_ref, b3_ref[...]))
    res4 = res3 + 0.5 * _linear(h2, w4_ref, row(6))
    out_ref[0] = _layer_norm(res4, row(7), row(8))


# ----------------------------------------------------------------------------
# host-side wrapper
# ----------------------------------------------------------------------------
def _pick_t_tile(T, t_tile):
    if t_tile is not None:
        assert T % t_tile == 0 and t_tile % 8 == 0, "t_tile must divide T and be a multiple of 8"
        return t_tile
    for cand in (256, 128, 64, 32, 16, 8):
        if T % cand == 0:
            return cand
    raise ValueError("T must be a multiple of 8")


def _vmem_limit_bytes():
    cap = 64 * 1024 * 1024
    try:
        cap = int(getattr(pltpu.get_tpu_info(), "vmem_capacity_bytes", cap))
    except Exception:
        pass
    # ~102 MiB on 128 MiB parts (v5e/v6e), ~51 MiB on 64 MiB parts (v7x)
    return int(min(max(cap * 0.8, 32 * 1024 * 1024), 110 * 1024 * 1024))


def _bf16_vpu_ok():
    # bf16 EUP / VALU exist on v6e and v7x; keep f32 on v5e and older.
    try:
        kind = jax.devices()[0].device_kind.lower()
    except Exception:
        return False
    return ("v6" in kind) or ("v7" in kind) or ("7x" in kind)


def conformer_layer_pallas(x, pos_emb, params, n_heads, kernel_size, t_tile=None):
    B, T, D = x.shape
    K = kernel_size
    pad = (K - 1) // 2
    p = params
    assert D % n_heads == 0, "rel-pos layout assumes D == n_heads * dk (heads contiguous in lanes)"
    Tq = _pick_t_tile(T, t_tile)
    nT = T // Tq
    grid = (B, nT)

    bf16_units = _bf16_vpu_ok()
    cparams = pltpu.CompilerParams(
        dimension_semantics=("parallel", "parallel"),
        vmem_limit_bytes=_vmem_limit_bytes())

    r32 = lambda v: v.reshape(1, -1).astype(F32)
    tb = lambda w: w.T.astype(BF16)                 # Linear weight -> (in, out) bf16

    # --- host-side prep --------------------------------------------------------
    # rel-pos table projected through linear_pos; one window per query tile so the
    # in-kernel rel-shift needs no dynamic roll amount.
    pe = pos_emb.astype(F32) @ p["wpos"].astype(F32).T          # (2T-1, D)
    win = T + Tq - 1
    Pw = max(128, ((T + Tq + 127) // 128) * 128)
    pe_win = jnp.stack(
        [jnp.pad(pe[T - (qi + 1) * Tq: T - (qi + 1) * Tq + win],
                 ((0, Pw - win), (0, 0)))
         for qi in range(nT)], axis=0).astype(BF16)             # (nT, Pw, D)

    # fold eval-mode BatchNorm (running stats) into the depthwise conv
    s = p["bn_g"] / jnp.sqrt(p["bn_rv"] + BN_EPS)
    wdw_fold = (p["dw_w"][:, 0, :].T * s[None, :]).astype(F32)  # (K, D)
    bdw_fold = (p["dw_b"] - p["bn_rm"]) * s + p["bn_b"]         # (D,)

    # packed small parameters: one (rows, D) slab per stage
    vec1 = jnp.stack([p["ln1_g"], p["ln1_b"], p["ff1_b2"],
                      p["lna_g"], p["lna_b"], p["bq"], p["bk"], p["bv"]], 0).astype(F32)
    vec2 = jnp.stack([p["bo"], p["pos_bias_u"].reshape(-1),
                      p["pos_bias_v"].reshape(-1)], 0).astype(F32)
    vec3 = jnp.stack([p["lnc_g"], p["lnc_b"], bdw_fold, p["pw2_b"],
                      p["ln2_g"], p["ln2_b"], p["ff2_b2"],
                      p["lno_g"], p["lno_b"]], 0).astype(F32)

    s1_args = (vec1, r32(p["ff1_b1"]),
               tb(p["ff1_w1"]), tb(p["ff1_w2"]), tb(p["wq"]), tb(p["wk"]), tb(p["wv"]))
    s2_args = (vec2, tb(p["wo"]))
    s3_args = (vec3, r32(p["pw1_b"]), r32(p["ff2_b1"]),
               tb(p["pw1_w"]), wdw_fold, tb(p["pw2_w"]), tb(p["ff2_w1"]), tb(p["ff2_w2"]))

    x_bf = x.astype(BF16)                            # halve input HBM traffic

    def run(single_buffer_consts):
        def tile_spec():
            return pl.BlockSpec((1, Tq, D), lambda b, i: (b, i, 0))

        def full_t_spec():
            return pl.BlockSpec((1, T, D), lambda b, i: (b, 0, 0))

        def const_spec(a):
            nd = a.ndim
            idx = lambda b, i: (0,) * nd
            if single_buffer_consts:
                # weights never change across the grid -> single-buffer them
                return pl.BlockSpec(a.shape, idx, pipeline_mode=pl.Buffered(1))
            return pl.BlockSpec(a.shape, idx)

        # ---- stage 1: FFN1 + attention LN + QKV -------------------------------
        res1, q_bf, k_bf, v_bf = pl.pallas_call(
            _stage1_kernel,
            out_shape=(jax.ShapeDtypeStruct((B, T, D), F32),
                       jax.ShapeDtypeStruct((B, T, D), BF16),
                       jax.ShapeDtypeStruct((B, T, D), BF16),
                       jax.ShapeDtypeStruct((B, T, D), BF16)),
            grid_spec=pltpu.PrefetchScalarGridSpec(
                num_scalar_prefetch=0, grid=grid,
                in_specs=[tile_spec()] + [const_spec(a) for a in s1_args],
                out_specs=[tile_spec(), tile_spec(), tile_spec(), tile_spec()]),
            compiler_params=cparams,
        )(x_bf, *s1_args)

        # ---- stage 2: rel-pos MHSA with per-head Wo fusion ---------------------
        res2 = pl.pallas_call(
            partial(_stage2_kernel, n_heads=n_heads, exp_bf16=bf16_units),
            out_shape=jax.ShapeDtypeStruct((B, T, D), F32),
            grid_spec=pltpu.PrefetchScalarGridSpec(
                num_scalar_prefetch=0, grid=grid,
                in_specs=[tile_spec(),                                   # res1 tile
                          tile_spec(),                                   # q tile
                          full_t_spec(),                                 # k (full T)
                          full_t_spec(),                                 # v (full T)
                          pl.BlockSpec((1, Pw, D), lambda b, i: (i, 0, 0))]  # pe window
                         + [const_spec(a) for a in s2_args],
                out_specs=tile_spec()),
            compiler_params=cparams,
        )(res1, q_bf, k_bf, v_bf, pe_win, *s2_args)

        # ---- stage 3: conv module (halo) + FFN2 + output LN --------------------
        res2_pad = jnp.pad(res2, ((0, 0), (pad, pad), (0, 0)))
        out = pl.pallas_call(
            partial(_stage3_kernel, kernel_size=K, t_len=T, conv_bf16=bf16_units),
            out_shape=jax.ShapeDtypeStruct((B, T, D), F32),
            grid_spec=pltpu.PrefetchScalarGridSpec(
                num_scalar_prefetch=0, grid=grid,
                in_specs=[pl.BlockSpec(memory_space=pl.ANY)]
                         + [const_spec(a) for a in s3_args],
                out_specs=tile_spec(),
                scratch_shapes=[pltpu.VMEM((Tq + 2 * pad, D), F32),
                                pltpu.SemaphoreType.DMA]),
            compiler_params=cparams,
        )(res2_pad, *s3_args)
        return out

    try:
        return run(True)
    except Exception:
        # fall back to default (double-buffered) constant operands if pl.Buffered(1)
        # is not supported by this JAX build
        return run(False)


# ----------------------------------------------------------------------------
# parameter init (mirrors the PyTorch module's reset_parameters)
# ----------------------------------------------------------------------------
def init_params(key, d_model, d_ff, n_heads, kernel_size):
    dk = d_model // n_heads
    keys = iter(jax.random.split(key, 64))

    def u(shape, scale):
        return jax.random.uniform(next(keys), shape, jnp.float32, -scale, scale)

    s_d, s_ff, s_k = d_model ** -0.5, d_ff ** -0.5, kernel_size ** -0.5
    p = {}
    for name in ("ln1", "lna", "lnc", "ln2", "lno"):
        p[f"{name}_g"] = 1.0 + 0.1 * u((d_model,), 1.0)
        p[f"{name}_b"] = 0.1 * u((d_model,), 1.0)
    for name in ("ff1", "ff2"):
        p[f"{name}_w1"] = u((d_ff, d_model), s_d); p[f"{name}_b1"] = u((d_ff,), s_d)
        p[f"{name}_w2"] = u((d_model, d_ff), s_ff); p[f"{name}_b2"] = u((d_model,), s_ff)
    for name in ("wq", "wk", "wv", "wo", "wpos"):
        p[name] = u((d_model, d_model), s_d)
    for name in ("bq", "bk", "bv", "bo"):
        p[name] = u((d_model,), s_d)
    p["pos_bias_u"] = u((n_heads, dk), 0.1)
    p["pos_bias_v"] = u((n_heads, dk), 0.1)
    p["pw1_w"] = u((2 * d_model, d_model), s_d); p["pw1_b"] = u((2 * d_model,), s_d)
    p["dw_w"] = u((d_model, 1, kernel_size), s_k); p["dw_b"] = u((d_model,), s_k)
    p["bn_g"] = 1.0 + 0.1 * u((d_model,), 1.0)
    p["bn_b"] = 0.1 * u((d_model,), 1.0)
    p["bn_rm"] = 0.1 * u((d_model,), 1.0)
    p["bn_rv"] = 1.0 + 0.1 * u((d_model,), 1.0)
    p["pw2_w"] = u((d_model, d_model), s_d); p["pw2_b"] = u((d_model,), s_d)
    return p


# ----------------------------------------------------------------------------
# pure-JAX f32 reference (follows the PyTorch forward, incl. pad/reshape rel_shift)
# ----------------------------------------------------------------------------
def conformer_layer_ref(x, pos_emb, p, n_heads, kernel_size):
    f32 = jnp.float32
    x = x.astype(f32)
    B, T, D = x.shape
    dk = D // n_heads
    K = kernel_size
    pad = (K - 1) // 2

    def ln(v, g, b):
        mu = v.mean(-1, keepdims=True)
        vc = v - mu
        var = (vc * vc).mean(-1, keepdims=True)
        return vc / jnp.sqrt(var + LN_EPS) * g + b

    def swish(v):
        return v * jax.nn.sigmoid(v)

    def ff(v, w1, b1, w2, b2):
        return swish(v @ w1.T + b1) @ w2.T + b2

    res = x + 0.5 * ff(ln(x, p["ln1_g"], p["ln1_b"]),
                       p["ff1_w1"], p["ff1_b1"], p["ff1_w2"], p["ff1_b2"])

    xa = ln(res, p["lna_g"], p["lna_b"])

    def heads(v, w, b):
        return (v @ w.T + b).reshape(B, T, n_heads, dk).transpose(0, 2, 1, 3)

    q = heads(xa, p["wq"], p["bq"])
    k = heads(xa, p["wk"], p["bk"])
    v = heads(xa, p["wv"], p["bv"])
    pe = (pos_emb.astype(f32) @ p["wpos"].T).reshape(2 * T - 1, n_heads, dk).transpose(1, 0, 2)
    ac = jnp.einsum("bhid,bhjd->bhij", q + p["pos_bias_u"][None, :, None, :], k)
    bd_full = jnp.einsum("bhid,hjd->bhij", q + p["pos_bias_v"][None, :, None, :], pe)
    bpad = jnp.pad(bd_full, ((0, 0), (0, 0), (0, 0), (1, 0)))
    bshift = bpad.reshape(B, n_heads, 2 * T, T)[:, :, 1:, :].reshape(B, n_heads, T, 2 * T - 1)[..., :T]
    scores = (ac + bshift) / math.sqrt(dk)
    att = jax.nn.softmax(scores, axis=-1)
    ctx = jnp.einsum("bhij,bhjd->bhid", att, v).transpose(0, 2, 1, 3).reshape(B, T, D)
    res = res + (ctx @ p["wo"].T + p["bo"])

    xc = ln(res, p["lnc_g"], p["lnc_b"])
    pw1 = xc @ p["pw1_w"].T + p["pw1_b"]
    glu = pw1[..., :D] * jax.nn.sigmoid(pw1[..., D:])
    xp = jnp.pad(glu, ((0, 0), (pad, pad), (0, 0)))
    wdw = p["dw_w"][:, 0, :]                         # (D, K)
    dconv = sum(wdw[:, kk][None, None, :] * xp[:, kk:kk + T, :] for kk in range(K)) + p["dw_b"]
    bn = (dconv - p["bn_rm"]) / jnp.sqrt(p["bn_rv"] + BN_EPS) * p["bn_g"] + p["bn_b"]
    res = res + (swish(bn) @ p["pw2_w"].T + p["pw2_b"])

    res = res + 0.5 * ff(ln(res, p["ln2_g"], p["ln2_b"]),
                         p["ff2_w1"], p["ff2_b1"], p["ff2_w2"], p["ff2_b2"])
    return ln(res, p["lno_g"], p["lno_b"])


if __name__ == "__main__":
    # small shapes consistent with the module: (B, T, d_model), d_ff, n_heads, conv kernel
    # t_tile=16 so the (B, T//Tq) grid / halo / per-tile rel-shift paths are exercised.
    B, T, D, DFF, H, K = 2, 32, 64, 128, 4, 7
    key = jax.random.PRNGKey(0)
    kx, kp, kpe = jax.random.split(key, 3)
    x = jax.random.normal(kx, (B, T, D), jnp.float32)
    pos_emb = jax.random.normal(kpe, (2 * T - 1, D), jnp.float32)   # rel-pos table (2T-1, d_model)
    params = init_params(kp, D, DFF, H, K)

    # TODO(synk): att_mask / pad_mask / cache_last_channel / cache_last_time (streaming)
    # paths and adapter/access mixins are not implemented; eval-mode only.
    out = conformer_layer_pallas(x, pos_emb, params, H, K, t_tile=16)
    out = jax.block_until_ready(out)

    ref = conformer_layer_ref(x, pos_emb, params, H, K)
    assert out.shape == (B, T, D)
    assert bool(jnp.all(jnp.isfinite(out)))
    # tolerance accounts for bf16 MXU operands, bf16 x input and (on v6e/v7x) bf16 exp
    # in the kernel vs the pure-f32 reference
    if not jnp.allclose(out, ref, rtol=7.5e-2, atol=7.5e-2):
        raise AssertionError(
            f"kernel/reference mismatch, max abs err {float(jnp.max(jnp.abs(out - ref)))}")
    print("KERNEL_OK")
</pallas_src>

<mosaic_0001>
module attributes {stable_mosaic.version = 11 : i64} {
  func.func @_stage1_kernel(%arg0: i32, %arg1: i32, %arg2: memref<1x16x64xbf16, #tpu.memory_space<vmem>>, %arg3: memref<8x64xf32, #tpu.memory_space<vmem>>, %arg4: memref<1x128xf32, #tpu.memory_space<vmem>>, %arg5: memref<64x128xbf16, #tpu.memory_space<vmem>>, %arg6: memref<128x64xbf16, #tpu.memory_space<vmem>>, %arg7: memref<64x64xbf16, #tpu.memory_space<vmem>>, %arg8: memref<64x64xbf16, #tpu.memory_space<vmem>>, %arg9: memref<64x64xbf16, #tpu.memory_space<vmem>>, %arg10: memref<1x16x64xf32, #tpu.memory_space<vmem>>, %arg11: memref<1x16x64xbf16, #tpu.memory_space<vmem>>, %arg12: memref<1x16x64xbf16, #tpu.memory_space<vmem>>, %arg13: memref<1x16x64xbf16, #tpu.memory_space<vmem>>) attributes {dimension_semantics = [#tpu.dimension_semantics<parallel>, #tpu.dimension_semantics<parallel>], iteration_bounds = array<i64: 2, 2>, scalar_prefetch = 0 : i64, scratch_operands = 0 : i64, tpu.core_type = #tpu.core_type<tc>, window_params = [{transform_indices = @transform_0, window_bounds = array<i64: 1, 16, 64>}, {pipeline_mode = #tpu.pipeline_mode<synchronous>, transform_indices = @transform_1, window_bounds = array<i64: 8, 64>}, {pipeline_mode = #tpu.pipeline_mode<synchronous>, transform_indices = @transform_2, window_bounds = array<i64: 1, 128>}, {pipeline_mode = #tpu.pipeline_mode<synchronous>, transform_indices = @transform_3, window_bounds = array<i64: 64, 128>}, {pipeline_mode = #tpu.pipeline_mode<synchronous>, transform_indices = @transform_4, window_bounds = array<i64: 128, 64>}, {pipeline_mode = #tpu.pipeline_mode<synchronous>, transform_indices = @transform_5, window_bounds = array<i64: 64, 64>}, {pipeline_mode = #tpu.pipeline_mode<synchronous>, transform_indices = @transform_6, window_bounds = array<i64: 64, 64>}, {pipeline_mode = #tpu.pipeline_mode<synchronous>, transform_indices = @transform_7, window_bounds = array<i64: 64, 64>}, {transform_indices = @transform_8, window_bounds = array<i64: 1, 16, 64>}, {transform_indices = @transform_9, window_bounds = array<i64: 1, 16, 64>}, {transform_indices = @transform_10, window_bounds = array<i64: 1, 16, 64>}, {transform_indices = @transform_11, window_bounds = array<i64: 1, 16, 64>}]} {
    %c0 = arith.constant 0 : index
    %c0_0 = arith.constant 0 : index
    %c0_1 = arith.constant 0 : index
    %0 = vector.load %arg2[%c0, %c0_0, %c0_1] : memref<1x16x64xbf16, #tpu.memory_space<vmem>>, vector<1x16x64xbf16>
    %1 = vector.shape_cast %0 : vector<1x16x64xbf16> to vector<16x64xbf16>
    %2 = arith.extf %1 : vector<16x64xbf16> to vector<16x64xf32>
    %c0_2 = arith.constant 0 : index
    %c0_3 = arith.constant 0 : index
    %3 = vector.load %arg3[%c0_2, %c0_3] : memref<8x64xf32, #tpu.memory_space<vmem>>, vector<1x64xf32>
    %c1 = arith.constant 1 : index
    %c0_4 = arith.constant 0 : index
    %4 = vector.load %arg3[%c1, %c0_4] : memref<8x64xf32, #tpu.memory_space<vmem>>, vector<1x64xf32>
    %cst = arith.constant dense<0.000000e+00> : vector<16xf32>
    %5 = vector.multi_reduction <add>, %2, %cst [1] : vector<16x64xf32> to vector<16xf32>
    %6 = vector.shape_cast %5 : vector<16xf32> to vector<16x1xf32>
    %cst_5 = arith.constant 6.400000e+01 : f32
    %7 = vector.broadcast %cst_5 : f32 to vector<16x1xf32>
    %8 = arith.divf %6, %7 : vector<16x1xf32>
    %9 = vector.broadcast %8 : vector<16x1xf32> to vector<16x64xf32>
    %10 = arith.subf %2, %9 : vector<16x64xf32>
    %11 = arith.mulf %10, %10 : vector<16x64xf32>
    %cst_6 = arith.constant dense<0.000000e+00> : vector<16xf32>
    %12 = vector.multi_reduction <add>, %11, %cst_6 [1] : vector<16x64xf32> to vector<16xf32>
    %13 = vector.shape_cast %12 : vector<16xf32> to vector<16x1xf32>
    %cst_7 = arith.constant 6.400000e+01 : f32
    %14 = vector.broadcast %cst_7 : f32 to vector<16x1xf32>
    %15 = arith.divf %13, %14 : vector<16x1xf32>
    %cst_8 = arith.constant 9.99999974E-6 : f32
    %16 = vector.broadcast %cst_8 : f32 to vector<16x1xf32>
    %17 = arith.addf %15, %16 : vector<16x1xf32>
    %18 = math.rsqrt %17 : vector<16x1xf32>
    %19 = vector.broadcast %18 : vector<16x1xf32> to vector<16x64xf32>
    %20 = arith.mulf %10, %19 : vector<16x64xf32>
    %21 = vector.broadcast %3 : vector<1x64xf32> to vector<16x64xf32>
    %22 = arith.mulf %20, %21 : vector<16x64xf32>
    %23 = vector.broadcast %4 : vector<1x64xf32> to vector<16x64xf32>
    %24 = arith.addf %22, %23 : vector<16x64xf32>
    %c0_9 = arith.constant 0 : index
    %c0_10 = arith.constant 0 : index
    %25 = vector.load %arg4[%c0_9, %c0_10] : memref<1x128xf32, #tpu.memory_space<vmem>>, vector<1x128xf32>
    %26 = arith.truncf %24 : vector<16x64xf32> to vector<16x64xbf16>
    %c0_11 = arith.constant 0 : index
    %c0_12 = arith.constant 0 : index
    %27 = vector.load %arg5[%c0_11, %c0_12] : memref<64x128xbf16, #tpu.memory_space<vmem>>, vector<64x128xbf16>
    %cst_13 = arith.constant dense<0.000000e+00> : vector<16x128xf32>
    %28 = tpu.matmul %26, %27, %cst_13 {dimension_numbers = #tpu.dot_dimension_numbers<[1], [0], [0], [1], [0, 0, 1, 1], [], []>} : vector<16x64xbf16>, vector<64x128xbf16>, vector<16x128xf32> -> vector<16x128xf32>
    %29 = vector.broadcast %25 : vector<1x128xf32> to vector<16x128xf32>
    %30 = arith.addf %28, %29 : vector<16x128xf32>
    %31 = arith.negf %30 : vector<16x128xf32>
    %32 = math.exp %31 : vector<16x128xf32>
    %cst_14 = arith.constant 1.000000e+00 : f32
    %33 = vector.broadcast %cst_14 : f32 to vector<16x128xf32>
    %34 = arith.addf %33, %32 : vector<16x128xf32>
    %35 = arith.divf %33, %34 : vector<16x128xf32>
    %36 = arith.mulf %30, %35 : vector<16x128xf32>
    %c2 = arith.constant 2 : index
    %c0_15 = arith.constant 0 : index
    %37 = vector.load %arg3[%c2, %c0_15] : memref<8x64xf32, #tpu.memory_space<vmem>>, vector<1x64xf32>
    %38 = arith.truncf %36 : vector<16x128xf32> to vector<16x128xbf16>
    %c0_16 = arith.constant 0 : index
    %c0_17 = arith.constant 0 : index
    %39 = vector.load %arg6[%c0_16, %c0_17] : memref<128x64xbf16, #tpu.memory_space<vmem>>, vector<128x64xbf16>
    %cst_18 = arith.constant dense<0.000000e+00> : vector<16x64xf32>
    %40 = tpu.matmul %38, %39, %cst_18 {dimension_numbers = #tpu.dot_dimension_numbers<[1], [0], [0], [1], [0, 0, 1, 1], [], []>} : vector<16x128xbf16>, vector<128x64xbf16>, vector<16x64xf32> -> vector<16x64xf32>
    %41 = vector.broadcast %37 : vector<1x64xf32> to vector<16x64xf32>
    %42 = arith.addf %40, %41 : vector<16x64xf32>
    %cst_19 = arith.constant 5.000000e-01 : f32
    %43 = vector.broadcast %cst_19 : f32 to vector<16x64xf32>
    %44 = arith.mulf %43, %42 : vector<16x64xf32>
    %45 = arith.addf %2, %44 : vector<16x64xf32>
    %c0_20 = arith.constant 0 : index
    %c0_21 = arith.constant 0 : index
    %c0_22 = arith.constant 0 : index
    %46 = vector.load %arg10[%c0_20, %c0_21, %c0_22] : memref<1x16x64xf32, #tpu.memory_space<vmem>>, vector<1x16x64xf32>
    %47 = vector.shape_cast %46 : vector<1x16x64xf32> to vector<16x64xf32>
    %48 = vector.shape_cast %45 : vector<16x64xf32> to vector<1x16x64xf32>
    tpu.vector_store %arg10[%c0_20, %c0_21, %c0_22], %48 {strides = array<i32>} : memref<1x16x64xf32, #tpu.memory_space<vmem>>, vector<1x16x64xf32>,
    %c3 = arith.constant 3 : index
    %c0_23 = arith.constant 0 : index
    %49 = vector.load %arg3[%c3, %c0_23] : memref<8x64xf32, #tpu.memory_space<vmem>>, vector<1x64xf32>
    %c4 = arith.constant 4 : index
    %c0_24 = arith.constant 0 : index
    %50 = vector.load %arg3[%c4, %c0_24] : memref<8x64xf32, #tpu.memory_space<vmem>>, vector<1x64xf32>
    %cst_25 = arith.constant dense<0.000000e+00> : vector<16xf32>
    %51 = vector.multi_reduction <add>, %45, %cst_25 [1] : vector<16x64xf32> to vector<16xf32>
    %52 = vector.shape_cast %51 : vector<16xf32> to vector<16x1xf32>
    %cst_26 = arith.constant 6.400000e+01 : f32
    %53 = vector.broadcast %cst_26 : f32 to vector<16x1xf32>
    %54 = arith.divf %52, %53 : vector<16x1xf32>
    %55 = vector.broadcast %54 : vector<16x1xf32> to vector<16x64xf32>
    %56 = arith.subf %45, %55 : vector<16x64xf32>
    %57 = arith.mulf %56, %56 : vector<16x64xf32>
    %cst_27 = arith.constant dense<0.000000e+00> : vector<16xf32>
    %58 = vector.multi_reduction <add>, %57, %cst_27 [1] : vector<16x64xf32> to vector<16xf32>
    %59 = vector.shape_cast %58 : vector<16xf32> to vector<16x1xf32>
    %cst_28 = arith.constant 6.400000e+01 : f32
    %60 = vector.broadcast %cst_28 : f32 to vector<16x1xf32>
    %61 = arith.divf %59, %60 : vector<16x1xf32>
    %cst_29 = arith.constant 9.99999974E-6 : f32
    %62 = vector.broadcast %cst_29 : f32 to vector<16x1xf32>
    %63 = arith.addf %61, %62 : vector<16x1xf32>
    %64 = math.rsqrt %63 : vector<16x1xf32>
    %65 = vector.broadcast %64 : vector<16x1xf32> to vector<16x64xf32>
    %66 = arith.mulf %56, %65 : vector<16x64xf32>
    %67 = vector.broadcast %49 : vector<1x64xf32> to vector<16x64xf32>
    %68 = arith.mulf %66, %67 : vector<16x64xf32>
    %69 = vector.broadcast %50 : vector<1x64xf32> to vector<16x64xf32>
    %70 = arith.addf %68, %69 : vector<16x64xf32>
    %71 = arith.truncf %70 : vector<16x64xf32> to vector<16x64xbf16>
    %c0_30 = arith.constant 0 : index
    %c0_31 = arith.constant 0 : index
    %72 = vector.load %arg7[%c0_30, %c0_31] : memref<64x64xbf16, #tpu.memory_space<vmem>>, vector<64x64xbf16>
    %cst_32 = arith.constant dense<0.000000e+00> : vector<16x64xf32>
    %73 = tpu.matmul %71, %72, %cst_32 {dimension_numbers = #tpu.dot_dimension_numbers<[1], [0], [0], [1], [0, 0, 1, 1], [], []>} : vector<16x64xbf16>, vector<64x64xbf16>, vector<16x64xf32> -> vector<16x64xf32>
    %c5 = arith.constant 5 : index
    %c0_33 = arith.constant 0 : index
    %74 = vector.load %arg3[%c5, %c0_33] : memref<8x64xf32, #tpu.memory_space<vmem>>, vector<1x64xf32>
    %75 = vector.broadcast %74 : vector<1x64xf32> to vector<16x64xf32>
    %76 = arith.addf %73, %75 : vector<16x64xf32>
    %77 = arith.truncf %76 : vector<16x64xf32> to vector<16x64xbf16>
    %c0_34 = arith.constant 0 : index
    %c0_35 = arith.constant 0 : index
    %c0_36 = arith.constant 0 : index
    %78 = vector.load %arg11[%c0_34, %c0_35, %c0_36] : memref<1x16x64xbf16, #tpu.memory_space<vmem>>, vector<1x16x64xbf16>
    %79 = vector.shape_cast %78 : vector<1x16x64xbf16> to vector<16x64xbf16>
    %80 = vector.shape_cast %77 : vector<16x64xbf16> to vector<1x16x64xbf16>
    tpu.vector_store %arg11[%c0_34, %c0_35, %c0_36], %80 {strides = array<i32>} : memref<1x16x64xbf16, #tpu.memory_space<vmem>>, vector<1x16x64xbf16>,
    %c0_37 = arith.constant 0 : index
    %c0_38 = arith.constant 0 : index
    %81 = vector.load %arg8[%c0_37, %c0_38] : memref<64x64xbf16, #tpu.memory_space<vmem>>, vector<64x64xbf16>
    %cst_39 = arith.constant dense<0.000000e+00> : vector<16x64xf32>
    %82 = tpu.matmul %71, %81, %cst_39 {dimension_numbers = #tpu.dot_dimension_numbers<[1], [0], [0], [1], [0, 0, 1, 1], [], []>} : vector<16x64xbf16>, vector<64x64xbf16>, vector<16x64xf32> -> vector<16x64xf32>
    %c6 = arith.constant 6 : index
    %c0_40 = arith.constant 0 : index
    %83 = vector.load %arg3[%c6, %c0_40] : memref<8x64xf32, #tpu.memory_space<vmem>>, vector<1x64xf32>
    %84 = vector.broadcast %83 : vector<1x64xf32> to vector<16x64xf32>
    %85 = arith.addf %82, %84 : vector<16x64xf32>
    %86 = arith.truncf %85 : vector<16x64xf32> to vector<16x64xbf16>
    %c0_41 = arith.constant 0 : index
    %c0_42 = arith.constant 0 : index
    %c0_43 = arith.constant 0 : index
    %87 = vector.load %arg12[%c0_41, %c0_42, %c0_43] : memref<1x16x64xbf16, #tpu.memory_space<vmem>>, vector<1x16x64xbf16>
    %88 = vector.shape_cast %87 : vector<1x16x64xbf16> to vector<16x64xbf16>
    %89 = vector.shape_cast %86 : vector<16x64xbf16> to vector<1x16x64xbf16>
    tpu.vector_store %arg12[%c0_41, %c0_42, %c0_43], %89 {strides = array<i32>} : memref<1x16x64xbf16, #tpu.memory_space<vmem>>, vector<1x16x64xbf16>,
    %c0_44 = arith.constant 0 : index
    %c0_45 = arith.constant 0 : index
    %90 = vector.load %arg9[%c0_44, %c0_45] : memref<64x64xbf16, #tpu.memory_space<vmem>>, vector<64x64xbf16>
    %cst_46 = arith.constant dense<0.000000e+00> : vector<16x64xf32>
    %91 = tpu.matmul %71, %90, %cst_46 {dimension_numbers = #tpu.dot_dimension_numbers<[1], [0], [0], [1], [0, 0, 1, 1], [], []>} : vector<16x64xbf16>, vector<64x64xbf16>, vector<16x64xf32> -> vector<16x64xf32>
    %c7 = arith.constant 7 : index
    %c0_47 = arith.constant 0 : index
    %92 = vector.load %arg3[%c7, %c0_47] : memref<8x64xf32, #tpu.memory_space<vmem>>, vector<1x64xf32>
    %93 = vector.broadcast %92 : vector<1x64xf32> to vector<16x64xf32>
    %94 = arith.addf %91, %93 : vector<16x64xf32>
    %95 = arith.truncf %94 : vector<16x64xf32> to vector<16x64xbf16>
    %c0_48 = arith.constant 0 : index
    %c0_49 = arith.constant 0 : index
    %c0_50 = arith.constant 0 : index
    %96 = vector.load %arg13[%c0_48, %c0_49, %c0_50] : memref<1x16x64xbf16, #tpu.memory_space<vmem>>, vector<1x16x64xbf16>
    %97 = vector.shape_cast %96 : vector<1x16x64xbf16> to vector<16x64xbf16>
    %98 = vector.shape_cast %95 : vector<16x64xbf16> to vector<1x16x64xbf16>
    tpu.vector_store %arg13[%c0_48, %c0_49, %c0_50], %98 {strides = array<i32>} : memref<1x16x64xbf16, #tpu.memory_space<vmem>>, vector<1x16x64xbf16>,
    return
  }
  func.func @transform_0(%arg0: i32, %arg1: i32) -> (i32, i32, i32) {
    %c0_i32 = arith.constant 0 : i32
    %c0_i32_0 = arith.constant 0 : i32
    return %arg0, %arg1, %c0_i32 : i32, i32, i32
  }
  func.func @transform_1(%arg0: i32, %arg1: i32) -> (i32, i32) {
    %c0_i32 = arith.constant 0 : i32
    %c0_i32_0 = arith.constant 0 : i32
    %c0_i32_1 = arith.constant 0 : i32
    return %c0_i32, %c0_i32_0 : i32, i32
  }
  func.func @transform_2(%arg0: i32, %arg1: i32) -> (i32, i32) {
    %c0_i32 = arith.constant 0 : i32
    %c0_i32_0 = arith.constant 0 : i32
    %c0_i32_1 = arith.constant 0 : i32
    return %c0_i32, %c0_i32_0 : i32, i32
  }
  func.func @transform_3(%arg0: i32, %arg1: i32) -> (i32, i32) {
    %c0_i32 = arith.constant 0 : i32
    %c0_i32_0 = arith.constant 0 : i32
    %c0_i32_1 = arith.constant 0 : i32
    return %c0_i32, %c0_i32_0 : i32, i32
  }
  func.func @transform_4(%arg0: i32, %arg1: i32) -> (i32, i32) {
    %c0_i32 = arith.constant 0 : i32
    %c0_i32_0 = arith.constant 0 : i32
    %c0_i32_1 = arith.constant 0 : i32
    return %c0_i32, %c0_i32_0 : i32, i32
  }
  func.func @transform_5(%arg0: i32, %arg1: i32) -> (i32, i32) {
    %c0_i32 = arith.constant 0 : i32
    %c0_i32_0 = arith.constant 0 : i32
    %c0_i32_1 = arith.constant 0 : i32
    return %c0_i32, %c0_i32_0 : i32, i32
  }
  func.func @transform_6(%arg0: i32, %arg1: i32) -> (i32, i32) {
    %c0_i32 = arith.constant 0 : i32
    %c0_i32_0 = arith.constant 0 : i32
    %c0_i32_1 = arith.constant 0 : i32
    return %c0_i32, %c0_i32_0 : i32, i32
  }
  func.func @transform_7(%arg0: i32, %arg1: i32) -> (i32, i32) {
    %c0_i32 = arith.constant 0 : i32
    %c0_i32_0 = arith.constant 0 : i32
    %c0_i32_1 = arith.constant 0 : i32
    return %c0_i32, %c0_i32_0 : i32, i32
  }
  func.func @transform_8(%arg0: i32, %arg1: i32) -> (i32, i32, i32) {
    %c0_i32 = arith.constant 0 : i32
    %c0_i32_0 = arith.constant 0 : i32
    return %arg0, %arg1, %c0_i32 : i32, i32, i32
  }
  func.func @transform_9(%arg0: i32, %arg1: i32) -> (i32, i32, i32) {
    %c0_i32 = arith.constant 0 : i32
    %c0_i32_0 = arith.constant 0 : i32
    return %arg0, %arg1, %c0_i32 : i32, i32, i32
  }
  func.func @transform_10(%arg0: i32, %arg1: i32) -> (i32, i32, i32) {
    %c0_i32 = arith.constant 0 : i32
    %c0_i32_0 = arith.constant 0 : i32
    return %arg0, %arg1, %c0_i32 : i32, i32, i32
  }
  func.func @transform_11(%arg0: i32, %arg1: i32) -> (i32, i32, i32) {
    %c0_i32 = arith.constant 0 : i32
    %c0_i32_0 = arith.constant 0 : i32
    return %arg0, %arg1, %c0_i32 : i32, i32, i32
  }
}

module attributes {stable_mosaic.version = 11 : i64} {
  func.func @_stage1_kernel(%arg0: i32, %arg1: i32, %arg2: memref<1x16x64xbf16, #tpu.memory_space<vmem>>, %arg3: memref<8x64xf32, #tpu.memory_space<vmem>>, %arg4: memref<1x128xf32, #tpu.memory_space<vmem>>, %arg5: memref<64x128xbf16, #tpu.memory_space<vmem>>, %arg6: memref<128x64xbf16, #tpu.memory_space<vmem>>, %arg7: memref<64x64xbf16, #tpu.memory_space<vmem>>, %arg8: memref<64x64xbf16, #tpu.memory_space<vmem>>, %arg9: memref<64x64xbf16, #tpu.memory_space<vmem>>, %arg10: memref<1x16x64xf32, #tpu.memory_space<vmem>>, %arg11: memref<1x16x64xbf16, #tpu.memory_space<vmem>>, %arg12: memref<1x16x64xbf16, #tpu.memory_space<vmem>>, %arg13: memref<1x16x64xbf16, #tpu.memory_space<vmem>>) attributes {dimension_semantics = [#tpu.dimension_semantics<parallel>, #tpu.dimension_semantics<parallel>], iteration_bounds = array<i64: 2, 2>, scalar_prefetch = 0 : i64, scratch_operands = 0 : i64, tpu.core_type = #tpu.core_type<tc>, window_params = [{transform_indices = @transform_0, window_bounds = array<i64: 1, 16, 64>}, {pipeline_mode = #tpu.pipeline_mode<synchronous>, transform_indices = @transform_1, window_bounds = array<i64: 8, 64>}, {pipeline_mode = #tpu.pipeline_mode<synchronous>, transform_indices = @transform_2, window_bounds = array<i64: 1, 128>}, {pipeline_mode = #tpu.pipeline_mode<synchronous>, transform_indices = @transform_3, window_bounds = array<i64: 64, 128>}, {pipeline_mode = #tpu.pipeline_mode<synchronous>, transform_indices = @transform_4, window_bounds = array<i64: 128, 64>}, {pipeline_mode = #tpu.pipeline_mode<synchronous>, transform_indices = @transform_5, window_bounds = array<i64: 64, 64>}, {pipeline_mode = #tpu.pipeline_mode<synchronous>, transform_indices = @transform_6, window_bounds = array<i64: 64, 64>}, {pipeline_mode = #tpu.pipeline_mode<synchronous>, transform_indices = @transform_7, window_bounds = array<i64: 64, 64>}, {transform_indices = @transform_8, window_bounds = array<i64: 1, 16, 64>}, {transform_indices = @transform_9, window_bounds = array<i64: 1, 16, 64>}, {transform_indices = @transform_10, window_bounds = array<i64: 1, 16, 64>}, {transform_indices = @transform_11, window_bounds = array<i64: 1, 16, 64>}]} {
    %c0 = arith.constant 0 : index
    %c0_0 = arith.constant 0 : index
    %c0_1 = arith.constant 0 : index
    %0 = vector.load %arg2[%c0, %c0_0, %c0_1] : memref<1x16x64xbf16, #tpu.memory_space<vmem>>, vector<1x16x64xbf16>
    %1 = vector.shape_cast %0 : vector<1x16x64xbf16> to vector<16x64xbf16>
    %2 = arith.extf %1 : vector<16x64xbf16> to vector<16x64xf32>
    %c0_2 = arith.constant 0 : index
    %c0_3 = arith.constant 0 : index
    %3 = vector.load %arg3[%c0_2, %c0_3] : memref<8x64xf32, #tpu.memory_space<vmem>>, vector<1x64xf32>
    %c1 = arith.constant 1 : index
    %c0_4 = arith.constant 0 : index
    %4 = vector.load %arg3[%c1, %c0_4] : memref<8x64xf32, #tpu.memory_space<vmem>>, vector<1x64xf32>
    %cst = arith.constant dense<0.000000e+00> : vector<16xf32>
    %5 = vector.multi_reduction <add>, %2, %cst [1] : vector<16x64xf32> to vector<16xf32>
    %6 = vector.shape_cast %5 : vector<16xf32> to vector<16x1xf32>
    %cst_5 = arith.constant 6.400000e+01 : f32
    %7 = vector.broadcast %cst_5 : f32 to vector<16x1xf32>
    %8 = arith.divf %6, %7 : vector<16x1xf32>
    %9 = vector.broadcast %8 : vector<16x1xf32> to vector<16x64xf32>
    %10 = arith.subf %2, %9 : vector<16x64xf32>
    %11 = arith.mulf %10, %10 : vector<16x64xf32>
    %cst_6 = arith.constant dense<0.000000e+00> : vector<16xf32>
    %12 = vector.multi_reduction <add>, %11, %cst_6 [1] : vector<16x64xf32> to vector<16xf32>
    %13 = vector.shape_cast %12 : vector<16xf32> to vector<16x1xf32>
    %cst_7 = arith.constant 6.400000e+01 : f32
    %14 = vector.broadcast %cst_7 : f32 to vector<16x1xf32>
    %15 = arith.divf %13, %14 : vector<16x1xf32>
    %cst_8 = arith.constant 9.99999974E-6 : f32
    %16 = vector.broadcast %cst_8 : f32 to vector<16x1xf32>
    %17 = arith.addf %15, %16 : vector<16x1xf32>
    %18 = math.rsqrt %17 : vector<16x1xf32>
    %19 = vector.broadcast %18 : vector<16x1xf32> to vector<16x64xf32>
    %20 = arith.mulf %10, %19 : vector<16x64xf32>
    %21 = vector.broadcast %3 : vector<1x64xf32> to vector<16x64xf32>
    %22 = arith.mulf %20, %21 : vector<16x64xf32>
    %23 = vector.broadcast %4 : vector<1x64xf32> to vector<16x64xf32>
    %24 = arith.addf %22, %23 : vector<16x64xf32>
    %c0_9 = arith.constant 0 : index
    %c0_10 = arith.constant 0 : index
    %25 = vector.load %arg4[%c0_9, %c0_10] : memref<1x128xf32, #tpu.memory_space<vmem>>, vector<1x128xf32>
    %26 = arith.truncf %24 : vector<16x64xf32> to vector<16x64xbf16>
    %c0_11 = arith.constant 0 : index
    %c0_12 = arith.constant 0 : index
    %27 = vector.load %arg5[%c0_11, %c0_12] : memref<64x128xbf16, #tpu.memory_space<vmem>>, vector<64x128xbf16>
    %cst_13 = arith.constant dense<0.000000e+00> : vector<16x128xf32>
    %28 = tpu.matmul %26, %27, %cst_13 {dimension_numbers = #tpu.dot_dimension_numbers<[1], [0], [0], [1], [0, 0, 1, 1], [], []>} : vector<16x64xbf16>, vector<64x128xbf16>, vector<16x128xf32> -> vector<16x128xf32>
    %29 = vector.broadcast %25 : vector<1x128xf32> to vector<16x128xf32>
    %30 = arith.addf %28, %29 : vector<16x128xf32>
    %31 = arith.negf %30 : vector<16x128xf32>
    %32 = math.exp %31 : vector<16x128xf32>
    %cst_14 = arith.constant 1.000000e+00 : f32
    %33 = vector.broadcast %cst_14 : f32 to vector<16x128xf32>
    %34 = arith.addf %33, %32 : vector<16x128xf32>
    %35 = arith.divf %33, %34 : vector<16x128xf32>
    %36 = arith.mulf %30, %35 : vector<16x128xf32>
    %c2 = arith.constant 2 : index
    %c0_15 = arith.constant 0 : index
    %37 = vector.load %arg3[%c2, %c0_15] : memref<8x64xf32, #tpu.memory_space<vmem>>, vector<1x64xf32>
    %38 = arith.truncf %36 : vector<16x128xf32> to vector<16x128xbf16>
    %c0_16 = arith.constant 0 : index
    %c0_17 = arith.constant 0 : index
    %39 = vector.load %arg6[%c0_16, %c0_17] : memref<128x64xbf16, #tpu.memory_space<vmem>>, vector<128x64xbf16>
    %cst_18 = arith.constant dense<0.000000e+00> : vector<16x64xf32>
    %40 = tpu.matmul %38, %39, %cst_18 {dimension_numbers = #tpu.dot_dimension_numbers<[1], [0], [0], [1], [0, 0, 1, 1], [], []>} : vector<16x128xbf16>, vector<128x64xbf16>, vector<16x64xf32> -> vector<16x64xf32>
    %41 = vector.broadcast %37 : vector<1x64xf32> to vector<16x64xf32>
    %42 = arith.addf %40, %41 : vector<16x64xf32>
    %cst_19 = arith.constant 5.000000e-01 : f32
    %43 = vector.broadcast %cst_19 : f32 to vector<16x64xf32>
    %44 = arith.mulf %43, %42 : vector<16x64xf32>
    %45 = arith.addf %2, %44 : vector<16x64xf32>
    %c0_20 = arith.constant 0 : index
    %c0_21 = arith.constant 0 : index
    %c0_22 = arith.constant 0 : index
    %46 = vector.load %arg10[%c0_20, %c0_21, %c0_22] : memref<1x16x64xf32, #tpu.memory_space<vmem>>, vector<1x16x64xf32>
    %47 = vector.shape_cast %46 : vector<1x16x64xf32> to vector<16x64xf32>
    %48 = vector.shape_cast %45 : vector<16x64xf32> to vector<1x16x64xf32>
    tpu.vector_store %arg10[%c0_20, %c0_21, %c0_22], %48 {strides = array<i32>} : memref<1x16x64xf32, #tpu.memory_space<vmem>>, vector<1x16x64xf32>,
    %c3 = arith.constant 3 : index
    %c0_23 = arith.constant 0 : index
    %49 = vector.load %arg3[%c3, %c0_23] : memref<8x64xf32, #tpu.memory_space<vmem>>, vector<1x64xf32>
    %c4 = arith.constant 4 : index
    %c0_24 = arith.constant 0 : index
    %50 = vector.load %arg3[%c4, %c0_24] : memref<8x64xf32, #tpu.memory_space<vmem>>, vector<1x64xf32>
    %cst_25 = arith.constant dense<0.000000e+00> : vector<16xf32>
    %51 = vector.multi_reduction <add>, %45, %cst_25 [1] : vector<16x64xf32> to vector<16xf32>
    %52 = vector.shape_cast %51 : vector<16xf32> to vector<16x1xf32>
    %cst_26 = arith.constant 6.400000e+01 : f32
    %53 = vector.broadcast %cst_26 : f32 to vector<16x1xf32>
    %54 = arith.divf %52, %53 : vector<16x1xf32>
    %55 = vector.broadcast %54 : vector<16x1xf32> to vector<16x64xf32>
    %56 = arith.subf %45, %55 : vector<16x64xf32>
    %57 = arith.mulf %56, %56 : vector<16x64xf32>
    %cst_27 = arith.constant dense<0.000000e+00> : vector<16xf32>
    %58 = vector.multi_reduction <add>, %57, %cst_27 [1] : vector<16x64xf32> to vector<16xf32>
    %59 = vector.shape_cast %58 : vector<16xf32> to vector<16x1xf32>
    %cst_28 = arith.constant 6.400000e+01 : f32
    %60 = vector.broadcast %cst_28 : f32 to vector<16x1xf32>
    %61 = arith.divf %59, %60 : vector<16x1xf32>
    %cst_29 = arith.constant 9.99999974E-6 : f32
    %62 = vector.broadcast %cst_29 : f32 to vector<16x1xf32>
    %63 = arith.addf %61, %62 : vector<16x1xf32>
    %64 = math.rsqrt %63 : vector<16x1xf32>
    %65 = vector.broadcast %64 : vector<16x1xf32> to vector<16x64xf32>
    %66 = arith.mulf %56, %65 : vector<16x64xf32>
    %67 = vector.broadcast %49 : vector<1x64xf32> to vector<16x64xf32>
    %68 = arith.mulf %66, %67 : vector<16x64xf32>
    %69 = vector.broadcast %50 : vector<1x64xf32> to vector<16x64xf32>
    %70 = arith.addf %68, %69 : vector<16x64xf32>
    %71 = arith.truncf %70 : vector<16x64xf32> to vector<16x64xbf16>
    %c0_30 = arith.constant 0 : index
    %c0_31 = arith.constant 0 : index
    %72 = vector.load %arg7[%c0_30, %c0_31] : memref<64x64xbf16, #tpu.memory_space<vmem>>, vector<64x64xbf16>
    %cst_32 = arith.constant dense<0.000000e+00> : vector<16x64xf32>
    %73 = tpu.matmul %71, %72, %cst_32 {dimension_numbers = #tpu.dot_dimension_numbers<[1], [0], [0], [1], [0, 0, 1, 1], [], []>} : vector<16x64xbf16>, vector<64x64xbf16>, vector<16x64xf32> -> vector<16x64xf32>
    %c5 = arith.constant 5 : index
    %c0_33 = arith.constant 0 : index
    %74 = vector.load %arg3[%c5, %c0_33] : memref<8x64xf32, #tpu.memory_space<vmem>>, vector<1x64xf32>
    %75 = vector.broadcast %74 : vector<1x64xf32> to vector<16x64xf32>
    %76 = arith.addf %73, %75 : vector<16x64xf32>
    %77 = arith.truncf %76 : vector<16x64xf32> to vector<16x64xbf16>
    %c0_34 = arith.constant 0 : index
    %c0_35 = arith.constant 0 : index
    %c0_36 = arith.constant 0 : index
    %78 = vector.load %arg11[%c0_34, %c0_35, %c0_36] : memref<1x16x64xbf16, #tpu.memory_space<vmem>>, vector<1x16x64xbf16>
    %79 = vector.shape_cast %78 : vector<1x16x64xbf16> to vector<16x64xbf16>
    %80 = vector.shape_cast %77 : vector<16x64xbf16> to vector<1x16x64xbf16>
    tpu.vector_store %arg11[%c0_34, %c0_35, %c0_36], %80 {strides = array<i32>} : memref<1x16x64xbf16, #tpu.memory_space<vmem>>, vector<1x16x64xbf16>,
    %c0_37 = arith.constant 0 : index
    %c0_38 = arith.constant 0 : index
    %81 = vector.load %arg8[%c0_37, %c0_38] : memref<64x64xbf16, #tpu.memory_space<vmem>>, vector<64x64xbf16>
    %cst_39 = arith.constant dense<0.000000e+00> : vector<16x64xf32>
    %82 = tpu.matmul %71, %81, %cst_39 {dimension_numbers = #tpu.dot_dimension_numbers<[1], [0], [0], [1], [0, 0, 1, 1], [], []>} : vector<16x64xbf16>, vector<64x64xbf16>, vector<16x64xf32> -> vector<16x64xf32>
    %c6 = arith.constant 6 : index
    %c0_40 = arith.constant 0 : index
    %83 = vector.load %arg3[%c6, %c0_40] : memref<8x64xf32, #tpu.memory_space<vmem>>, vector<1x64xf32>
    %84 = vector.broadcast %83 : vector<1x64xf32> to vector<16x64xf32>
    %85 = arith.addf %82, %84 : vector<16x64xf32>
    %86 = arith.truncf %85 : vector<16x64xf32> to vector<16x64xbf16>
    %c0_41 = arith.constant 0 : index
    %c0_42 = arith.constant 0 : index
    %c0_43 = arith.constant 0 : index
    %87 = vector.load %arg12[%c0_41, %c0_42, %c0_43] : memref<1x16x64xbf16, #tpu.memory_space<vmem>>, vector<1x16x64xbf16>
    %88 = vector.shape_cast %87 : vector<1x16x64xbf16> to vector<16x64xbf16>
    %89 = vector.shape_cast %86 : vector<16x64xbf16> to vector<1x16x64xbf16>
    tpu.vector_store %arg12[%c0_41, %c0_42, %c0_43], %89 {strides = array<i32>} : memref<1x16x64xbf16, #tpu.memory_space<vmem>>, vector<1x16x64xbf16>,
    %c0_44 = arith.constant 0 : index
    %c0_45 = arith.constant 0 : index
    %90 = vector.load %arg9[%c0_44, %c0_45] : memref<64x64xbf16, #tpu.memory_space<vmem>>, vector<64x64xbf16>
    %cst_46 = arith.constant dense<0.000000e+00> : vector<16x64xf32>
    %91 = tpu.matmul %71, %90, %cst_46 {dimension_numbers = #tpu.dot_dimension_numbers<[1], [0], [0], [1], [0, 0, 1, 1], [], []>} : vector<16x64xbf16>, vector<64x64xbf16>, vector<16x64xf32> -> vector<16x64xf32>
    %c7 = arith.constant 7 : index
    %c0_47 = arith.constant 0 : index
    %92 = vector.load %arg3[%c7, %c0_47] : memref<8x64xf32, #tpu.memory_space<vmem>>, vector<1x64xf32>
    %93 = vector.broadcast %92 : vector<1x64xf32> to vector<16x64xf32>
    %94 = arith.addf %91, %93 : vector<16x64xf32>
    %95 = arith.truncf %94 : vector<16x64xf32> to vector<16x64xbf16>
    %c0_48 = arith.constant 0 : index
    %c0_49 = arith.constant 0 : index
    %c0_50 = arith.constant 0 : index
    %96 = vector.load %arg13[%c0_48, %c0_49, %c0_50] : memref<1x16x64xbf16, #tpu.memory_space<vmem>>, vector<1x16x64xbf16>
    %97 = vector.shape_cast %96 : vector<1x16x64xbf16> to vector<16x64xbf16>
    %98 = vector.shape_cast %95 : vector<16x64xbf16> to vector<1x16x64xbf16>
    tpu.vector_store %arg13[%c0_48, %c0_49, %c0_50], %98 {strides = array<i32>} : memref<1x16x64xbf16, #tpu.memory_space<vmem>>, vector<1x16x64xbf16>,
    return
  }
  func.func @transform_0(%arg0: i32, %arg1: i32) -> (i32, i32, i32) {
    %c0_i32 = arith.constant 0 : i32
    %c0_i32_0 = arith.constant 0 : i32
    return %arg0, %arg1, %c0_i32 : i32, i32, i32
  }
  func.func @transform_1(%arg0: i32, %arg1: i32) -> (i32, i32) {
    %c0_i32 = arith.constant 0 : i32
    %c0_i32_0 = arith.constant 0 : i32
    %c0_i32_1 = arith.constant 0 : i32
    return %c0_i32, %c0_i32_0 : i32, i32
  }
  func.func @transform_2(%arg0: i32, %arg1: i32) -> (i32, i32) {
    %c0_i32 = arith.constant 0 : i32
    %c0_i32_0 = arith.constant 0 : i32
    %c0_i32_1 = arith.constant 0 : i32
    return %c0_i32, %c0_i32_0 : i32, i32
  }
  func.func @transform_3(%arg0: i32, %arg1: i32) -> (i32, i32) {
    %c0_i32 = arith.constant 0 : i32
    %c0_i32_0 = arith.constant 0 : i32
    %c0_i32_1 = arith.constant 0 : i32
    return %c0_i32, %c0_i32_0 : i32, i32
  }
  func.func @transform_4(%arg0: i32, %arg1: i32) -> (i32, i32) {
    %c0_i32 = arith.constant 0 : i32
    %c0_i32_0 = arith.constant 0 : i32
    %c0_i32_1 = arith.constant 0 : i32
    return %c0_i32, %c0_i32_0 : i32, i32
  }
  func.func @transform_5(%arg0: i32, %arg1: i32) -> (i32, i32) {
    %c0_i32 = arith.constant 0 : i32
    %c0_i32_0 = arith.constant 0 : i32
    %c0_i32_1 = arith.constant 0 : i32
    return %c0_i32, %c0_i32_0 : i32, i32
  }
  func.func @transform_6(%arg0: i32, %arg1: i32) -> (i32, i32) {
    %c0_i32 = arith.constant 0 : i32
    %c0_i32_0 = arith.constant 0 : i32
    %c0_i32_1 = arith.constant 0 : i32
    return %c0_i32, %c0_i32_0 : i32, i32
  }
  func.func @transform_7(%arg0: i32, %arg1: i32) -> (i32, i32) {
    %c0_i32 = arith.constant 0 : i32
    %c0_i32_0 = arith.constant 0 : i32
    %c0_i32_1 = arith.constant 0 : i32
    return %c0_i32, %c0_i32_0 : i32, i32
  }
  func.func @transform_8(%arg0: i32, %arg1: i32) -> (i32, i32, i32) {
    %c0_i32 = arith.constant 0 : i32
    %c0_i32_0 = arith.constant 0 : i32
    return %arg0, %arg1, %c0_i32 : i32, i32, i32
  }
  func.func @transform_9(%arg0: i32, %arg1: i32) -> (i32, i32, i32) {
    %c0_i32 = arith.constant 0 : i32
    %c0_i32_0 = arith.constant 0 : i32
    return %arg0, %arg1, %c0_i32 : i32, i32, i32
  }
  func.func @transform_10(%arg0: i32, %arg1: i32) -> (i32, i32, i32) {
    %c0_i32 = arith.constant 0 : i32
    %c0_i32_0 = arith.constant 0 : i32
    return %arg0, %arg1, %c0_i32 : i32, i32, i32
  }
  func.func @transform_11(%arg0: i32, %arg1: i32) -> (i32, i32, i32) {
    %c0_i32 = arith.constant 0 : i32
    %c0_i32_0 = arith.constant 0 : i32
    return %arg0, %arg1, %c0_i32 : i32, i32, i32
  }
}

</mosaic_0001>

<bundles_post_ra>
// kernel: tpu_custom_call.1
= control target key start
LH: loop header
LB: loop body
LE: loop exit
PB: predicated region body
PF: predicated region fallthrough
CT: control target
= control target key end

     0   :  { %s2311_s0 = inlined_call_operand.vmem [shape: bf16[2,32,64], index: 0, kind: input, shape index: {}]   ;;  %s2312_s1 = inlined_call_operand.hbm [shape: f32[8,64], index: 1, kind: input, shape index: {}]   ;;  %s2313_s2 = inlined_call_operand.vmem [shape: f32[1,128], index: 2, kind: input, shape index: {}]   ;;  %s2314_s3 = inlined_call_operand.vmem [shape: bf16[64,128], index: 3, kind: input, shape index: {}]   ;;  %s2315_s4 = inlined_call_operand.vmem [shape: bf16[128,64], index: 4, kind: input, shape index: {}]   ;;  %s2316_s5 = inlined_call_operand.vmem [shape: bf16[64,64], index: 5, kind: input, shape index: {}]   ;;  %s2317_s6 = inlined_call_operand.hbm [shape: bf16[64,64], index: 6, kind: input, shape index: {}]   ;;  %s2318_s7 = inlined_call_operand.hbm [shape: bf16[64,64], index: 7, kind: input, shape index: {}]   ;;  %s2319_s8 = inlined_call_operand.hbm [shape: f32[2,32,64], index: 8, kind: output, shape index: {0}]   ;;  %s2320_s9 = inlined_call_operand.hbm [shape: bf16[2,32,64], index: 9, kind: output, shape index: {1}]   ;;  %s2321_s10 = inlined_call_operand.hbm [shape: bf16[2,32,64], index: 10, kind: output, shape index: {2}]   ;;  %s2322_s11 = inlined_call_operand.hbm [shape: bf16[2,32,64], index: 11, kind: output, shape index: {3}]  }
   0x1   :  { %2334 = sst [smem:[#allocation28_spill]] %s2311_s0 }
   0x2   :  { %2335 = sst [smem:[#allocation29_spill]] %s2317_s6 }
   0x3   :  { %2336 = sst [smem:[#allocation30_spill]] %s2321_s10 }
   0x4   :  { %17 = vsyncpa [#allocation3], 0 }
   0x5   :  { %18 = vsyncpa [#allocation6], 0 }
   0x6   :  { %19 = vsyncpa [#allocation4], 0 }
   0x7   :  { %21 = vsyncpa [#allocation4 + $0x1], 0 }
   0x8   :  { %22 = vsyncpa [#allocation10], 0 }
   0x9   :  { %24 = vsyncpa [#allocation10 + $0x1], 0 }
   0xa   :  { %25 = vsyncpa [#allocation13], 0 }
   0xb   :  { %27 = vsyncpa [#allocation13 + $0x1], 0  ;;  %s1941_s17 = smov 0   ;;  %s1943_s18 = smov 0  }
   0xc   :  { %s1945_s19 = smov 0   ;;  %s1947_s20 = smov 0  }
   0xd   :  { %s1949_s21 = smov 0   ;;  %s1951_s22 = smov 0  }
   0xe   :  { %s1953_s23 = smov 0   ;;  %s1955_s24 = smov 0  }
   0xf LB: > { %2337 = sst [smem:[#allocation19_spill]] %s1841_s17  ;;  %s1982_s25 = sadd.s32 4294967295, %s1869_s24   ;;  %s1869_s24 = sphi %s1955_s24, %s33_s24   ;;  %s1865_s23 = sphi %s1953_s23, %s2364_s23   ;;  %s1861_s22 = sphi %s1951_s22, %s2363_s22   ;;  %s1857_s21 = sphi %s1949_s21, %s2362_s21   ;;  %s1853_s20 = sphi %s1947_s20, %s2361_s20   ;;  %s1849_s19 = sphi %s1945_s19, %s2367_s19   ;;  %s1845_s18 = sphi %s1943_s18, %s2366_s18   ;;  %s1841_s17 = sphi %s1941_s17, %s2365_s17  }
  0x10   : > { %2338 = sst [smem:[#allocation20_spill]] %s1849_s19  ;;  %s2323_s26 = sadd.s32 4294967294, %s1869_s24  }
  0x11   : > { %2339 = sst [smem:[#allocation21_spill]] %s1861_s22  ;;  %s42_s27 = sadd.s32 1, %s1861_s22 }
  0x12   : > { %2340 = sst [smem:[#allocation22_spill]] %s1865_s23  ;;  %s45_s28 = sadd.s32 1, %s1865_s23 }
  0x13   : > { %2341 = sst [smem:[#allocation23_spill]] %s1869_s24  ;;  %p43_p0 = scmp.ge.s32.totalorder %s42_s27, 2 }
  0x14   : > { %s229_s29 = sadd.s32 1, %s1849_s19  ;;  %p239_p1 = scmp.ne.s32.totalorder %s1849_s19, %s1845_s18 }
  0x15   : > { %p240_p2 = scmp.eq.s32.totalorder %s1982_s25, 3  ;;  %s2369_s27 = smov (%p43_p0, %s42_s27), 0 }
  0x16   : > { %2342 = sst [smem:[#allocation24_spill]] %s2369_s27  ;;  %s2371_s28 = smov (!%p43_p0, %s45_s28), %s1865_s23 }
  0x17   : > { %s225_s30 = ssub.s32 %s1861_s22, %s2369_s27  ;;  %p1996_p3 = por %p240_p2, %p239_p1 }
  0x18   : > { %p47_p4 = scmp.ge.s32.totalorder %s2371_s28, 2  ;;  %p245_p5 = scmp.ne.s32.totalorder %s1845_s18, %s1841_s17 }
  0x19   : > { %p246_p6 = scmp.eq.s32.totalorder %s2323_s26, 3  ;;  %p1270_p7 = scmp.ge.s32.totalorder %s1869_s24, 1 }
  0x1a   : > { %s2373_s28 = smov (%p47_p4, %s2371_s28), 0  ;;  %p337_p9 = scmp.lt.s32.totalorder %s1869_s24, 5 }
  0x1b   : > { %2344 = sst [smem:[#allocation25_spill]] %s2373_s28  ;;  %p2007_p8 = por %p246_p6, %p245_p5 }
  0x1c   : > { %s224_s14 = ssub.s32 %s1865_s23, %s2373_s28  ;;  %p2014_p10 = pnand %p1270_p7, %p337_p9 }
  0x1d   : > { %s2345_s13 = scalar_select %p2007_p8, 1, 0 }
  0x1e   : > { %s226_s15 = sor.u32 %s225_s30, %s224_s14  ;;  %p1477_p12 = scmp.eq.s32.totalorder %s1982_s25, 0 }
  0x1f   : > { %2346 = sst [smem:[#allocation26_spill]] %s2345_s13  ;;  %p227_p11 = scmp.eq.s32.totalorder %s226_s15, 0 }
  0x20   : > { %p1454_p13 = pneg %p2014_p10  ;;  %s2348_s6 = sld [smem:[#allocation29_spill]] }
  0x21   : > { %s2025_s17 = scalar_select %p227_p11, %s1849_s19, %s229_s29  }
  0x22   : > { %p2029_p0 = pnand %p1477_p12, %p1454_p13  ;;  %s1871_s30 = smov [#allocation5]  }
  0x23   : > { %2349 = sst [smem:[#allocation27_spill]] %s2025_s17  ;;  %s374_s14 = sshll.u32 %s1871_s30, 4  ;;  %s375_s14 = int_to_ptr.vmem [resolvable:$true] %s374_s14 }
  0x24   : > { %s1872_s15 = smov 64   ;;  %s1873_s28 = smov 4  }
  0x25   : > { %s349_s29 = sshll.u32 %s2312_s1, 4  ;;  %s386_s24 = sshll.u32 %s2318_s7, 4  ;;  %s350_s29 = int_to_ptr.hbm [resolvable:$true] %s349_s29  ;;  %s387_s24 = int_to_ptr.hbm [resolvable:$true] %s386_s24 }
  0x26   : > { %s372_s22 = sshll.u32 %s2348_s6, 4  ;;  %s1874_s6 = smov [#allocation2]   ;;  %s373_s22 = int_to_ptr.hbm [resolvable:$true] %s372_s22 }
  0x27   : > { %1460 = dma.hbm_to_vmem [thread:$0]  (!%p2029_p0), %s373_s22, 512, %s375_s14, [#allocation6], %s1872_s15, %s1872_s15, %s1873_s28  }
  0x28   : > { %s351_s23 = sshll.u32 %s1874_s6, 4  ;;  %s1875_s30 = smov [#allocation7]   ;;  %s352_s23 = int_to_ptr.vmem [resolvable:$true] %s351_s23 }
  0x29   : > { %1457 = dma.hbm_to_vmem [thread:$0]  (!%p2029_p0), %s350_s29, 128, %s352_s23, [#allocation3]  }
  0x2a   : > { %s388_s10 = sshll.u32 %s1875_s30, 4  ;;  %417 = sbr.rel (%p2014_p10) target bundleno = 1092 (0x444), region = 52  ;;  %s389_s10 = int_to_ptr.vmem [resolvable:$true] %s388_s10 }
  0x2b   : > { %1463 = dma.hbm_to_vmem [thread:$0]  (!%p2029_p0), %s387_s24, 512, %s389_s10, [#allocation6], %s1872_s15, %s1872_s15, %s1873_s28  }
  0x2f   : > { %1820 = dma.done.wait (%p1477_p12), [#allocation3], 128  }
  0x30   : > { %1822 = vsyncadd (%p1477_p12), [#allocation3], 4294967168 }
  0x31   : > { %1824 = dma.done.wait (%p1477_p12), [#allocation6], 1024  }
  0x32   : > { %1826 = vsyncadd (%p1477_p12), [#allocation6], 4294966272  ;;  %s2056_s6 = sshll.u32 %s1853_s20, 1  ;;  %p488_p1 = scmp.lt.s32.totalorder %s1857_s21, 1  ;;  %vm508_vm0 = vcmask 523264   ;;  %v1876_v5 = vmov 64.0  }
  0x33   : > { %p490_p2 = scmp.lt.s32.totalorder %s2056_s6, 3  ;;  %s2351_s0 = sld [smem:[#allocation28_spill]]  ;;  %1567 = vrcp.f32 %v1876_v5  ;;  %v1409_v22 = vld [vmem:[%s2314_s3 + $0x18] sm:$0xff]  ;;  %v1408_v23 = vld [vmem:[%s2314_s3 + $0x10] sm:$0xff]  ;;  %v1407_v24 = vld [vmem:[%s2314_s3 + $0x8] sm:$0xff] }
  0x34   : > { %s489_s10 = scalar_select %p488_p1, %s1857_s21, 1  ;;  %610 = vmatpush.bf16.msra.mxu0 %v1409_v22  ;;  %v1406_v26 = vld [vmem:[%s2314_s3] sm:$0xff]  ;;  %v1417_v55 = vld [vmem:[%s2315_s4 + $0x38] sm:$0xff]  ;;  %v1416_v56 = vld [vmem:[%s2315_s4 + $0x30] sm:$0xff] }
  0x35   : > { %s491_s17 = scalar_select %p490_p2, %s2056_s6, 3  ;;  %v1558_v45 = vld [vmem:[#allocation2] ss:$0 sm:$0xff]  ;;  %v1559_v50 = vld [vmem:[#allocation2 + $0x1] ss:$0 sm:$0xff]  ;;  %727 = vmatpush.bf16.msra.mxu1 %v1417_v55  ;;  %v1415_v57 = vld [vmem:[%s2315_s4 + $0x28] sm:$0xff] }
  0x36   : > { %s1284_s19 = sshll.u32 %s489_s10, 2  ;;  %v1414_v58 = vld [vmem:[%s2315_s4 + $0x20] sm:$0xff]  ;;  %v1413_v59 = vld [vmem:[%s2315_s4 + $0x18] sm:$0xff]  ;;  %v1412_v61 = vld [vmem:[%s2315_s4 + $0x10] sm:$0xff]  ;;  %s1393_s27 = sshll.u32 %s1857_s21, 2 }
  0x37   : > { %s493_s22 = sadd.s32 %s1284_s19, %s491_s17  ;;  %v1560_v60 = vld [vmem:[%s2313_s2] ss:$0 sm:$0xff]  ;;  %s2124_s19 = sand.u32 1, %s1845_s18   ;;  %v1421_v55 = vld [vmem:[%s2316_s5 + $0x18] sm:$0xff] }
  0x38   : > { %s1285_s23 = sshll.u32 %s493_s22, 2  ;;  %611 = vmatpush.bf16.msra.mxu0 %v1408_v23  ;;  %s1279_s22 = sshll.u32 %s2124_s19, 4  ;;  %841 = vmatpush.bf16.msra.mxu2 %v1421_v55 }
  0x39   : > { %s495_s13 = scalar_lea.vmem %s2351_s0, %s1285_s23  ;;  %v1568_v6 = vpop.eup %1567  ;;  %728 = vmatpush.bf16.msra.mxu1 %v1416_v56  ;;  %s2128_s23 = scalar_lea.vmem [#allocation8], %s1279_s22  ;;  %v1425_v56 = vld [vmem:[#allocation5 + $0x18] sm:$0xff] }
  0x3a   : > { %v1431_v0 = vld [vmem:[%s495_s13] sm:$0xff]   ;;  %v516_v7 = vmul.f32 64.0, %v1568_v6  ;;  %vm520_vm1 = vweird.f32 %v1568_v6  ;;  %894 = vmatpush.bf16.msra.mxu3 %v1425_v56  ;;  %s987_s29 = sadd.s32 %s1393_s27, %s2056_s6  ;;  %s990_s28 = sshll.u32 %s2128_s23, 4  ;;  %s991_s28 = int_to_ptr.vmem [resolvable:$true] %s990_s28 }
  0x3b   : > { %v2065_v1 = vunpack.c.l.bf16 %v1431_v0  ;;  %v2069_v3 = vunpack.c.h.bf16 %v1431_v0  ;;  %v1411_v0 = vld [vmem:[%s2315_s4 + $0x8] sm:$0xff]  ;;  %s1394_s30 = sshll.u32 %s987_s29, 3  ;;  %s961_s13 = scalar_lea.sflag [#allocation4], %s2124_s19 }
  0x3c   : > { %v517_v8 = vsub.f32 1.0, %v516_v7  ;;  %612 = vmatpush.bf16.msra.mxu0 %v1407_v24  ;;  %s989_s22 = scalar_lea.hbm %s2319_s8, %s1394_s30  ;;  %s1695_s6 = scalar_lea.hbm %s2319_s8, 64 }
  0x3d   : > { %v509_v2 = vsel %vm508_vm0, %v2065_v1, 0.0  ;;  %v512_v4 = vsel %vm508_vm0, %v2069_v3, 0.0  ;;  %729 = vmatpush.bf16.msra.mxu1 %v1415_v57  ;;  %v1429_v57 = vld [vmem:[#allocation7 + $0x18] sm:$0xff]  ;;  %s992_s24 = sshll.u32 %s989_s22, 4  ;;  %s993_s24 = int_to_ptr.hbm [resolvable:$true] %s992_s24 }
  0x3e   : > { %510 = vadd.xlane.f32.xlu0 %v509_v2  ;;  %v518_v9 = vmul.f32 %v1568_v6, %v517_v8  ;;  %s1689_s20 = sshra.s32 %s993_s24, 4  ;;  %s1690_s20 = int_to_ptr.hbm [resolvable:$true] %s1689_s20 }
  0x3f   : > { %s1691_s16 = scalar_lea.hbm %s1690_s20, 16  ;;  %p1696_p7 = scmp.lt.s32.totalorder %s1690_s20, %s2319_s8 }
  0x40   : > { %v519_v10 = vadd.f32 %v1568_v6, %v518_v9  ;;  %613 = vmatpush.bf16.msra.mxu0 %v1406_v26  ;;  %p1692_p4 = scmp.ne.s32.totalorder %s1690_s20, %s1691_s16  ;;  %p1697_p9 = scmp.lt.s32.totalorder %s1695_s6, %s1691_s16 }
  0x41   : > { %730 = vmatpush.bf16.msra.mxu1 %v1414_v58  ;;  %v1420_v58 = vld [vmem:[%s2316_s5 + $0x10] sm:$0xff] }
  0x42   : > { %v2073_v11 = vsel %vm520_vm1, %v1568_v6, %v519_v10  ;;  %842 = vmatpush.bf16.msra.mxu2 %v1420_v58  ;;  %p1693_p5 = pnand %p1692_p4, %p1996_p3  ;;  %p1698_p10 = por %p1697_p9, %p1696_p7 }
  0x44   : > { %946 = vmatpush.bf16.msrb.mxu0 %v1429_v57  ;;  %p1694_p6 = pneg %p1693_p5 }
  0x45   : > { %731 = vmatpush.bf16.msra.mxu1 %v1413_v59  ;;  %v1424_v59 = vld [vmem:[#allocation5 + $0x10] sm:$0xff] }
  0x46   : > { %513 = vadd.xlane.f32.xlu0 %v512_v4  ;;  %v1410_v4 = vld [vmem:[%s2315_s4] sm:$0xff]  ;;  %895 = vmatpush.bf16.msra.mxu3 %v1424_v59  ;;  %p1699_p11 = pnand %p1698_p10, %p1694_p6 }
  0x49   : > { %732 = vmatpush.bf16.msra.mxu1 %v1412_v61  ;;  %v1419_v61 = vld [vmem:[%s2316_s5 + $0x8] sm:$0xff] }
  0x4a   : > { %843 = vmatpush.bf16.msra.mxu2 %v1419_v61 }
  0x4d   : > { %733 = vmatpush.bf16.msra.mxu1 %v1411_v0 }
  0x51   : > { %734 = vmatpush.bf16.msra.mxu1 %v1410_v4  ;;  %v1422_v4 = vld [vmem:[#allocation5] sm:$0xff] }
  0xb1   : > { %v511_v12 = vpop.xlane.xlu0 %510 }
  0xb2   : > { %v522_v13 = vmul.f32 %v2073_v11, %v511_v12 }
  0xb4   : > { %v524_v14 = vsub.f32 %v2065_v1, %v522_v13 }
  0xb6   : > { %v526_v15 = vmul.f32 %v524_v14, %v524_v14 }
  0xb8   : > { %v528_v16 = vsel %vm508_vm0, %v526_v15, 0.0 }
  0xb9   : > { %529 = vadd.xlane.f32.xlu1 %v528_v16  ;;  %v514_v17 = vpop.xlane.xlu0 %513 }
  0xba   : > { %v523_v18 = vmul.f32 %v2073_v11, %v514_v17 }
  0xbc   : > { %v525_v19 = vsub.f32 %v2069_v3, %v523_v18 }
  0xbe   : > { %v527_v20 = vmul.f32 %v525_v19, %v525_v19 }
  0xc0   : > { %v531_v21 = vsel %vm508_vm0, %v527_v20, 0.0 }
  0xc1   : > { %532 = vadd.xlane.f32.xlu1 %v531_v21 }
 0x12c   : > { %v530_v25 = vpop.xlane.xlu1 %529 }
 0x12d   : > { %v534_v27 = vmul.f32 %v530_v25, %v2073_v11 }
 0x12f   : > { %v536_v28 = vadd.f32 1e-05, %v534_v27 }
 0x131   : > { %1569 = vrsqrt.f32 %v536_v28  ;;  %vm544_vm3 = vweird.f32 %v536_v28 }
 0x134   : > { %v533_v29 = vpop.xlane.xlu1 %532 }
 0x135   : > { %v535_v30 = vmul.f32 %v533_v29, %v2073_v11 }
 0x137   : > { %v1570_v31 = vpop.eup %1569  ;;  %v537_v32 = vadd.f32 1e-05, %v535_v30 }
 0x138   : > { %v539_v33 = vmul.f32 %v1570_v31, %v536_v28  ;;  %vm545_vm2 = vweird.f32 %v1570_v31 }
 0x139   : > { %1571 = vrsqrt.f32 %v537_v32  ;;  %vm546_vm4 = vmor %vm544_vm3, %vm545_vm2  ;;  %vm554_vm6 = vweird.f32 %v537_v32 }
 0x13a   : > { %v540_v34 = vmul.f32 %v1570_v31, %v539_v33 }
 0x13c   : > { %v541_v35 = vmul.f32 0.5, %v540_v34 }
 0x13e   : > { %v542_v36 = vsub.f32 1.5, %v541_v35 }
 0x13f   : > { %v1572_v37 = vpop.eup %1571 }
 0x140   : > { %v543_v38 = vmul.f32 %v1570_v31, %v542_v36  ;;  %v549_v39 = vmul.f32 %v1572_v37, %v537_v32  ;;  %vm555_vm5 = vweird.f32 %v1572_v37  ;;  %v1561_v36 = vld [vmem:[#allocation2 + $0x2] ss:$0 sm:$0xff] }
 0x141   : > { %vm556_vm7 = vmor %vm554_vm6, %vm555_vm5 }
 0x142   : > { %v550_v40 = vmul.f32 %v1572_v37, %v549_v39  ;;  %v547_v41 = vsel %vm546_vm4, %v1570_v31, %v543_v38 }
 0x143   : > { %v558_v44 = vmul.f32 %v547_v41, %v524_v14 }
 0x144   : > { %v551_v42 = vmul.f32 0.5, %v550_v40 }
 0x145   : > { %v561_v49 = vmul.f32 %v1558_v45, %v558_v44 }
 0x146   : > { %v552_v43 = vsub.f32 1.5, %v551_v42 }
 0x147   : > { %v564_v52 = vadd.f32 %v1559_v50, %v561_v49 }
 0x148   : > { %v553_v46 = vmul.f32 %v1572_v37, %v552_v43 }
 0x14a   : > { %v557_v47 = vsel %vm556_vm7, %v1572_v37, %v553_v46 }
 0x14b   : > { %v559_v48 = vmul.f32 %v557_v47, %v525_v19 }
 0x14d   : > { %v562_v51 = vmul.f32 %v1558_v45, %v559_v48 }
 0x14f   : > { %v565_v53 = vadd.f32 %v1559_v50, %v562_v51 }
 0x151   : > { %v567_v54 = vpack.c.bf16 %v565_v53, %v564_v52 }
 0x153   : > { %1302 = vmatmul.msk.bf16.vlgmr.msra.gmra.mxu0 %vm508_vm0, %v567_v54 }
 0x1d0   : > { %v615_v62 = vpop.f32.mrf.mxu0 }
 0x1d1   : > { %v616_v63 = vadd.f32 %v1560_v60, %v615_v62  ;;  %v1423_v62 = vld [vmem:[#allocation5 + $0x8] sm:$0xff] }
 0x1d2   : > { %896 = vmatpush.bf16.msra.mxu3 %v1423_v62 }
 0x1d3   : > { %v1303_v2 = vmul.f32 -1.442695, %v616_v63 }
 0x1d5   : > { %1573 = vpow2.f32 %v1303_v2  ;;  %v1418_v2 = vld [vmem:[%s2316_s5] sm:$0xff] }
 0x1d6   : > { %844 = vmatpush.bf16.msra.mxu2 %v1418_v2  ;;  %897 = vmatpush.bf16.msra.mxu3 %v1422_v4 }
 0x1d8   : > { %v617_v5 = vpop.f32.mrf.mxu0 }
 0x1d9   : > { %v618_v6 = vadd.f32 %v1560_v60, %v617_v5  ;;  %v1428_v60 = vld [vmem:[#allocation7 + $0x10] sm:$0xff] }
 0x1da   : > { %947 = vmatpush.bf16.msrb.mxu0 %v1428_v60 }
 0x1db   : > { %v1574_v7 = vpop.eup %1573  ;;  %v1304_v8 = vmul.f32 -1.442695, %v618_v6 }
 0x1dc   : > { %v626_v9 = vadd.f32 1.0, %v1574_v7 }
 0x1dd   : > { %1575 = vpow2.f32 %v1304_v8 }
 0x1de   : > { %1577 = vrcp.f32 %v626_v9  ;;  %v639_v20 = vand.u32 2147483648, %v626_v9  ;;  %vm633_vm9 = vweird.f32 %v626_v9  ;;  %v637_v21 = vand.u32 2147483647, %v626_v9 }
 0x1e0   : > { %v640_v27 = vor.u32 1.1754944e-38, %v639_v20  ;;  %vm638_vm12 = vcmp.eq.f32.partialorder %v637_v21, 8.507059e+37 }
 0x1e3   : > { %v1576_v10 = vpop.eup %1575 }
 0x1e4   : > { %v1578_v12 = vpop.eup %1577  ;;  %v627_v13 = vadd.f32 1.0, %v1576_v10 }
 0x1e5   : > { %v629_v14 = vmul.f32 %v1578_v12, %v626_v9  ;;  %vm634_vm8 = vweird.f32 %v1578_v12 }
 0x1e6   : > { %1579 = vrcp.f32 %v627_v13  ;;  %vm635_vm10 = vmor %vm633_vm9, %vm634_vm8  ;;  %v654_v23 = vand.u32 2147483648, %v627_v13  ;;  %v652_v26 = vand.u32 2147483647, %v627_v13  ;;  %vm648_vm13 = vweird.f32 %v627_v13 }
 0x1e7   : > { %v630_v15 = vsub.f32 1.0, %v629_v14 }
 0x1e8   : > { %v655_v30 = vor.u32 1.1754944e-38, %v654_v23  ;;  %vm653_vm15 = vcmp.eq.f32.partialorder %v652_v26, 8.507059e+37 }
 0x1e9   : > { %v631_v16 = vmul.f32 %v1578_v12, %v630_v15 }
 0x1eb   : > { %v632_v18 = vadd.f32 %v1578_v12, %v631_v16 }
 0x1ec   : > { %v1580_v17 = vpop.eup %1579 }
 0x1ed   : > { %v644_v19 = vmul.f32 %v1580_v17, %v627_v13  ;;  %v636_v24 = vsel %vm635_vm10, %v1578_v12, %v632_v18  ;;  %vm649_vm11 = vweird.f32 %v1580_v17 }
 0x1ee   : > { %v641_v29 = vsel %vm638_vm12, %v640_v27, %v636_v24  ;;  %vm650_vm14 = vmor %vm648_vm13, %vm649_vm11 }
 0x1ef   : > { %v645_v22 = vsub.f32 1.0, %v644_v19  ;;  %v658_v33 = vmul.f32 %v641_v29, %v616_v63  ;;  %v1427_v63 = vld [vmem:[#allocation7 + $0x8] sm:$0xff]  ;;  %v1563_v29 = vld [vmem:[#allocation2 + $0x4] ss:$0 sm:$0xff] }
 0x1f0   : > { %948 = vmatpush.bf16.msrb.mxu0 %v1427_v63 }
 0x1f1   : > { %v646_v25 = vmul.f32 %v1580_v17, %v645_v22 }
 0x1f3   : > { %v647_v28 = vadd.f32 %v1580_v17, %v646_v25 }
 0x1f5   : > { %v651_v31 = vsel %vm650_vm14, %v1580_v17, %v647_v28 }
 0x1f6   : > { %v656_v32 = vsel %vm653_vm15, %v655_v30, %v651_v31 }
 0x1f7   : > { %v659_v34 = vmul.f32 %v656_v32, %v618_v6  ;;  %v1426_v6 = vld [vmem:[#allocation7] sm:$0xff] }
 0x1f8   : > { %949 = vmatpush.bf16.msrb.mxu0 %v1426_v6 }
 0x1f9   : > { %v661_v35 = vpack.c.bf16 %v659_v34, %v658_v33 }
 0x1fb   : > { %735 = vmatmul.bf16.vlgmr.msra.gmra.mxu1 %v661_v35 }
 0x278   : > { %v736_v37 = vpop.f32.mrf.mxu1 }
 0x279   : > { %v737_v38 = vadd.f32 %v1561_v36, %v736_v37 }
 0x27b   : > { %v741_v39 = vmul.f32 0.5, %v737_v38 }
 0x27d   : > { %v743_v40 = vadd.f32 %v2065_v1, %v741_v39 }
 0x27f   : > { %745 = vst.msk [vmem:[%s2128_s23] sm:$0xff] %vm508_vm0, %v743_v40  ;;  %v749_v41 = vsel %vm508_vm0, %v743_v40, 0.0 }
 0x280   : > { %v738_v42 = vpop.f32.mrf.mxu1  ;;  %750 = vadd.xlane.f32.xlu2 %v749_v41 }
 0x281   : > { %v739_v43 = vadd.f32 %v1561_v36, %v738_v42 }
 0x283   : > { %v742_v44 = vmul.f32 0.5, %v739_v43 }
 0x285   : > { %v744_v45 = vadd.f32 %v2069_v3, %v742_v44 }
 0x287   : > { %746 = vst.msk [vmem:[%s2128_s23 + $0x8] sm:$0xff] %vm508_vm0, %v744_v45  ;;  %v752_v46 = vsel %vm508_vm0, %v744_v45, 0.0 }
 0x288   : > { %753 = vadd.xlane.f32.xlu2 %v752_v46 }
 0x2f3   : > { %v751_v1 = vpop.xlane.xlu2 %750 }
 0x2f4   : > { %v755_v47 = vmul.f32 %v751_v1, %v2073_v11 }
 0x2f6   : > { %v757_v48 = vsub.f32 %v743_v40, %v755_v47 }
 0x2f8   : > { %v759_v49 = vmul.f32 %v757_v48, %v757_v48 }
 0x2fa   : > { %v761_v50 = vsel %vm508_vm0, %v759_v49, 0.0 }
 0x2fb   : > { %762 = vadd.xlane.f32.xlu0 %v761_v50  ;;  %v754_v51 = vpop.xlane.xlu2 %753 }
 0x2fc   : > { %v756_v52 = vmul.f32 %v754_v51, %v2073_v11 }
 0x2fe   : > { %v758_v53 = vsub.f32 %v744_v45, %v756_v52 }
 0x300   : > { %v760_v54 = vmul.f32 %v758_v53, %v758_v53 }
 0x302   : > { %v764_v3 = vsel %vm508_vm0, %v760_v54, 0.0 }
 0x303   : > { %765 = vadd.xlane.f32.xlu1 %v764_v3 }
 0x36e   : > { %v763_v0 = vpop.xlane.xlu0 %762 }
 0x36f   : > { %v767_v5 = vmul.f32 %v763_v0, %v2073_v11 }
 0x371   : > { %v769_v7 = vadd.f32 1e-05, %v767_v5 }
 0x373   : > { %1581 = vrsqrt.f32 %v769_v7  ;;  %vm777_vm2 = vweird.f32 %v769_v7 }
 0x376   : > { %v766_v8 = vpop.xlane.xlu1 %765 }
 0x377   : > { %v768_v9 = vmul.f32 %v766_v8, %v2073_v11  ;;  %v1562_v11 = vld [vmem:[#allocation2 + $0x3] ss:$0 sm:$0xff] }
 0x379   : > { %v1582_v10 = vpop.eup %1581  ;;  %v770_v12 = vadd.f32 1e-05, %v768_v9 }
 0x37a   : > { %v772_v13 = vmul.f32 %v1582_v10, %v769_v7  ;;  %vm778_vm1 = vweird.f32 %v1582_v10 }
 0x37b   : > { %1583 = vrsqrt.f32 %v770_v12  ;;  %vm779_vm3 = vmor %vm777_vm2, %vm778_vm1  ;;  %vm787_vm5 = vweird.f32 %v770_v12 }
 0x37c   : > { %v773_v14 = vmul.f32 %v1582_v10, %v772_v13 }
 0x37e   : > { %v774_v15 = vmul.f32 0.5, %v773_v14 }
 0x380   : > { %v775_v16 = vsub.f32 1.5, %v774_v15 }
 0x381   : > { %v1584_v17 = vpop.eup %1583 }
 0x382   : > { %v776_v18 = vmul.f32 %v1582_v10, %v775_v16  ;;  %v782_v19 = vmul.f32 %v1584_v17, %v770_v12  ;;  %vm788_vm4 = vweird.f32 %v1584_v17 }
 0x383   : > { %vm789_vm6 = vmor %vm787_vm5, %vm788_vm4 }
 0x384   : > { %v783_v20 = vmul.f32 %v1584_v17, %v782_v19  ;;  %v780_v21 = vsel %vm779_vm3, %v1582_v10, %v776_v18 }
 0x385   : > { %v791_v24 = vmul.f32 %v780_v21, %v757_v48 }
 0x386   : > { %v784_v22 = vmul.f32 0.5, %v783_v20 }
 0x387   : > { %v794_v28 = vmul.f32 %v1562_v11, %v791_v24 }
 0x388   : > { %v785_v23 = vsub.f32 1.5, %v784_v22 }
 0x389   : > { %v797_v31 = vadd.f32 %v1563_v29, %v794_v28 }
 0x38a   : > { %v786_v25 = vmul.f32 %v1584_v17, %v785_v23 }
 0x38c   : > { %v790_v26 = vsel %vm789_vm6, %v1584_v17, %v786_v25 }
 0x38d   : > { %v792_v27 = vmul.f32 %v790_v26, %v758_v53 }
 0x38f   : > { %v795_v30 = vmul.f32 %v1562_v11, %v792_v27 }
 0x391   : > { %v798_v32 = vadd.f32 %v1563_v29, %v795_v30 }
 0x393   : > { %v799_v33 = vpack.c.bf16 %v798_v32, %v797_v31 }
 0x395   : > { %1353 = vmatmul.msk.bf16.vlgmr.msra.gmra.mxu2 %vm508_vm0, %v799_v33  ;;  %1370 = vmatmul.msk.bf16.vlgmr.msra.gmra.mxu3 %vm508_vm0, %v799_v33 }
 0x396   : > { %1387 = vmatmul.msk.bf16.vlgmr.msrb.gmra.mxu0 %vm508_vm0, %v799_v33 }
 0x397   : > { %1702 = shalt.err (!%p1699_p11)
}
 0x398   : > { %s1877_s23 = smov 128   ;;  %s1878_s27 = smov 8   ;;  %v1564_v34 = vld [vmem:[#allocation2 + $0x7] ss:$0 sm:$0xff]  ;;  %vm853_vm0 = vcmask 519168  }
 0x399   : > { %1446 = dma.vmem_to_hbm [thread:$0]  (%p1996_p3), %s991_s28, 256, %s993_s24, %s961_s13, %s1877_s23, %s1877_s23, %s1878_s27   ;;  %v1565_v37 = vld [vmem:[#allocation2 + $0x5] ss:$0 sm:$0xff]  ;;  %v1566_v38 = vld [vmem:[#allocation2 + $0x6] ss:$0 sm:$0xff] }
 0x39a   : > { %s1280_s30 = sshll.u32 %s2124_s19, 3  ;;  %s2176_s10 = sshll.u32 %s987_s29, 2 }
 0x39b   : > { %s486_s17 = scalar_lea.vmem [#allocation12], %s1280_s30  ;;  %s1046_s24 = scalar_lea.hbm %s2322_s11, %s2176_s10 }
 0x39c   : > { %s1047_s29 = sshll.u32 %s486_s17, 4  ;;  %s2183_s28 = sshll.u32 %s1046_s24, 4  ;;  %s2197_s29 = int_to_ptr.vmem [resolvable:$true] %s1047_s29  ;;  %s1050_s28 = int_to_ptr.hbm [resolvable:$true] %s2183_s28 }
 0x39d   : > { %s1008_s14 = scalar_lea.hbm %s2320_s9, %s2176_s10  ;;  %s2189_s21 = scalar_lea.vmem [#allocation9], %s1280_s30 }
 0x39e   : > { %s2193_s6 = scalar_lea.vmem [#allocation11], %s1280_s30  ;;  %s2352_s23 = sld [smem:[#allocation30_spill]] }
 0x39f   : > { %s1009_s20 = sshll.u32 %s2189_s21, 4  ;;  %s965_s24 = sand.u32 1, %s1982_s25   ;;  %s1010_s20 = int_to_ptr.vmem [resolvable:$true] %s1009_s20 }
 0x3a0   : > { %s2207_s30 = sshll.u32 %s1008_s14, 4  ;;  %s976_s13 = scalar_lea.sflag [#allocation13], %s2124_s19  ;;  %s1012_s30 = int_to_ptr.hbm [resolvable:$true] %s2207_s30 }
 0x3a1   : > { %s1717_s16 = sshra.s32 %s1050_s28, 4  ;;  %s1718_s16 = int_to_ptr.hbm [resolvable:$true] %s1717_s16 }
 0x3a2   : > { %s1719_s0 = scalar_lea.hbm %s1718_s16, 8  ;;  %p1724_p1 = scmp.lt.s32.totalorder %s1718_s16, %s2322_s11 }
 0x3a3   : > { %p1720_p12 = scmp.ne.s32.totalorder %s1718_s16, %s1719_s0 }
 0x3a4   : > { %s2353_s27 = smov %s2352_s23 }
 0x3a5   : > { %p1721_p13 = pnand %p1720_p12, %p1996_p3 }
 0x3a7   : > { %p1722_p0 = pneg %p1721_p13 }
 0x413   : > { %v951_v35 = vpop.f32.mrf.mxu0 }
 0x414   : > { %v952_v36 = vadd.f32 %v1564_v34, %v951_v35 }
 0x416   : > { %v956_v39 = vpack.c.bf16 %v952_v36, %v952_v36 }
 0x418   : > { %958 = vst.msk [vmem:[%s486_s17] sm:$0xf] %vm853_vm0, %v956_v39  ;;  %v846_v40 = vpop.f32.mrf.mxu2  ;;  %v899_v41 = vpop.f32.mrf.mxu3 }
 0x419   : > { %v847_v42 = vadd.f32 %v1565_v37, %v846_v40  ;;  %v900_v43 = vadd.f32 %v1566_v38, %v899_v41 }
 0x41b   : > { %v851_v44 = vpack.c.bf16 %v847_v42, %v847_v42  ;;  %v904_v45 = vpack.c.bf16 %v900_v43, %v900_v43  ;;  %v953_v46 = vpop.f32.mrf.mxu0 }
 0x41c   : > { %v954_v1 = vadd.f32 %v1564_v34, %v953_v46 }
 0x41d   : > { %854 = vst.msk [vmem:[%s2189_s21] sm:$0xf] %vm853_vm0, %v851_v44 }
 0x41e   : > { %906 = vst.msk [vmem:[%s2193_s6] sm:$0xf] %vm853_vm0, %v904_v45  ;;  %v957_v47 = vpack.c.bf16 %v954_v1, %v954_v1 }
 0x420   : > { %959 = vst.msk [vmem:[%s486_s17 + $0x4] sm:$0xf] %vm853_vm0, %v957_v47  ;;  %v848_v48 = vpop.f32.mrf.mxu2  ;;  %v901_v49 = vpop.f32.mrf.mxu3  ;;  %s1723_s17 = scalar_lea.hbm %s2322_s11, 32 }
 0x421   : > { %v849_v50 = vadd.f32 %v1565_v37, %v848_v48  ;;  %v902_v51 = vadd.f32 %v1566_v38, %v901_v49  ;;  %p1725_p2 = scmp.lt.s32.totalorder %s1723_s17, %s1719_s0 }
 0x423   : > { %p1726_p4 = por %p1725_p2, %p1724_p1 }
 0x425   : > { %p1727_p5 = pnand %p1726_p4, %p1722_p0 }
 0x427   : > { %1730 = shalt.err (!%p1727_p5)
}
 0x428   : > { %s1879_s19 = smov 64   ;;  %s1880_s14 = smov 4   ;;  %v852_v52 = vpack.c.bf16 %v849_v50, %v849_v50  ;;  %v905_v53 = vpack.c.bf16 %v902_v51, %v902_v51 }
 0x429   : > { %1449 = dma.vmem_to_hbm [thread:$0]  (%p1996_p3), %s2197_s29, 128, %s1050_s28, %s976_s13, %s1879_s19, %s1879_s19, %s1880_s14  }
 0x42a   : > { %s2354_s16 = scalar_lea.hbm %s2353_s27, %s2176_s10  ;;  %s1028_s26 = sshll.u32 %s2193_s6, 4  ;;  %855 = vst.msk [vmem:[%s2189_s21 + $0x4] sm:$0xf] %vm853_vm0, %v852_v52  ;;  %s2238_s26 = int_to_ptr.vmem [resolvable:$true] %s1028_s26 }
 0x42b   : > { %s2233_s15 = sshll.u32 %s2354_s16, 4  ;;  %907 = vst.msk [vmem:[%s2193_s6 + $0x4] sm:$0xf] %vm853_vm0, %v905_v53  ;;  %s2246_s29 = scalar_lea.sflag [#allocation10], %s965_s24  ;;  %s1031_s15 = int_to_ptr.hbm [resolvable:$true] %s2233_s15 }
 0x42c   : > { %s1745_s10 = sshra.s32 %s1012_s30, 4  ;;  %s1751_s23 = scalar_lea.hbm %s2320_s9, 32  ;;  %s1746_s10 = int_to_ptr.hbm [resolvable:$true] %s1745_s10 }
 0x42d   : > { %s1747_s28 = scalar_lea.hbm %s1746_s10, 8  ;;  %p1752_p10 = scmp.lt.s32.totalorder %s1746_s10, %s2320_s9 }
 0x42e   : > { %p1748_p6 = scmp.ne.s32.totalorder %s1746_s10, %s1747_s28  ;;  %p1753_p11 = scmp.lt.s32.totalorder %s1751_s23, %s1747_s28 }
 0x430   : > { %p1749_p7 = pnand %p1748_p6, %p1996_p3  ;;  %p1754_p12 = por %p1753_p11, %p1752_p10 }
 0x432   : > { %p1750_p9 = pneg %p1749_p7 }
 0x434   : > { %p1755_p13 = pnand %p1754_p12, %p1750_p9 }
 0x436   : > { %1758 = shalt.err (!%p1755_p13)
}
 0x437   : > { %1447 = dma.vmem_to_hbm [thread:$0]  (%p1996_p3), %s1010_s20, 128, %s1012_s30, %s2246_s29, %s1879_s19, %s1879_s19, %s1880_s14  }
 0x438   : > { %s1773_s25 = sshra.s32 %s1031_s15, 4  ;;  %s1779_s16 = scalar_lea.hbm %s2353_s27, 32  ;;  %s1774_s25 = int_to_ptr.hbm [resolvable:$true] %s1773_s25 }
 0x439   : > { %s1775_s21 = scalar_lea.hbm %s1774_s25, 8  ;;  %p1780_p4 = scmp.lt.s32.totalorder %s1774_s25, %s2353_s27 }
 0x43a   : > { %p1776_p0 = scmp.ne.s32.totalorder %s1774_s25, %s1775_s21  ;;  %p1781_p5 = scmp.lt.s32.totalorder %s1779_s16, %s1775_s21 }
 0x43c   : > { %p1777_p1 = pnand %p1776_p0, %p1996_p3  ;;  %p1782_p6 = por %p1781_p5, %p1780_p4 }
 0x43e   : > { %p1778_p2 = pneg %p1777_p1 }
 0x440   : > { %p1783_p7 = pnand %p1782_p6, %p1778_p2 }
 0x442   : > { %1786 = shalt.err (!%p1783_p7)
}
 0x443   : > { %1448 = dma.vmem_to_hbm [thread:$0]  (%p1996_p3), %s2238_s26, 128, %s1031_s15, %s2246_s29, %s1879_s19, %s1879_s19, %s1880_s14  }
 0x444 PF: > { %s2355_s20 = sld [smem:[#allocation23_spill]] }
 0x445   : > { %s2356_s30 = sld [smem:[#allocation19_spill]] }
 0x44a   : > { %p1483_p9 = scmp.ge.s32.totalorder %s2355_s20, 2 }
 0x44b   : > { %s1064_s17 = sand.u32 1, %s2356_s30  }
 0x44c   : > { %p1465_p10 = pnand %p1483_p9, %p2007_p8  ;;  %s1065_s23 = scalar_lea.sflag [#allocation4], %s1064_s17 }
 0x44e   : > { %p1466_p11 = pneg %p1465_p10 }
 0x450   : > { %1828 = dma.done.wait (%p1466_p11), %s1065_s23, 256  }
 0x451   : > { %1830 = vsyncadd (%p1466_p11), %s1065_s23, 4294967040  ;;  %s2358_s12 = sadd.s32 4294967294, %s2355_s20  }
 0x452   : > { %s1074_s0 = sand.u32 1, %s2358_s12  }
 0x453   : > { %s1075_s22 = scalar_lea.sflag [#allocation10], %s1074_s0 }
 0x454   : > { %1832 = dma.done.wait (%p1466_p11), %s1075_s22, 256  }
 0x455   : > { %1834 = vsyncadd (%p1466_p11), %s1075_s22, 4294967040  ;;  %s1095_s25 = scalar_lea.sflag [#allocation13], %s1064_s17 }
 0x456   : > { %1836 = dma.done.wait (%p1466_p11), %s1095_s25, 128  }
 0x457   : > { %1838 = vsyncadd (%p1466_p11), %s1095_s25, 4294967168  ;;  %s33_s24 = sadd.s32 1, %s2355_s20   ;;  %s2359_s19 = sld [smem:[#allocation20_spill]] }
 0x458   : > { %p30_p3 = scmp.ge.s32.totalorder %s33_s24, 6   ;;  %s2360_s14 = sld [smem:[#allocation27_spill]] }
 0x459   : > { %s2361_s20 = sld [smem:[#allocation21_spill]]  ;;  %s2365_s17 = smov %s1845_s18 }
 0x45a   : > { %s2362_s21 = sld [smem:[#allocation22_spill]]  ;;  %32 = sbr.rel (!%p30_p3) target bundleno = 15 (0xf), region = 149 }
 0x45b   : > { %s2363_s22 = sld [smem:[#allocation24_spill]] }
 0x45c   : > { %s2364_s23 = sld [smem:[#allocation25_spill]] }
 0x45d   : > { %s2366_s18 = smov %s2359_s19 }
 0x45e   : > { %s2367_s19 = smov %s2360_s14 }
 0x45f   :  { %1101 = vsyncpa [#allocation3], 1 }
 0x460   :  { %1103 = vsyncpa [#allocation3 + $0x1], 1 }
 0x461   :  { %1104 = vsyncpa [#allocation6], 1 }
 0x462   :  { %1105 = vsyncpa [#allocation4], 1 }
 0x463   :  { %1107 = vsyncpa [#allocation4 + $0x1], 1 }
 0x464   :  { %1108 = vsyncpa [#allocation10], 1 }
 0x465   :  { %1110 = vsyncpa [#allocation10 + $0x1], 1 }
 0x466   :  { %1111 = vsyncpa [#allocation13], 1 }
 0x467   :  { %1113 = vsyncpa [#allocation13 + $0x1], 1 }

// kernel: tpu_custom_call.1
= control target key start
LH: loop header
LB: loop body
LE: loop exit
PB: predicated region body
PF: predicated region fallthrough
CT: control target
= control target key end

     0   :  { %s2311_s0 = inlined_call_operand.vmem [shape: bf16[2,32,64], index: 0, kind: input, shape index: {}]   ;;  %s2312_s1 = inlined_call_operand.hbm [shape: f32[8,64], index: 1, kind: input, shape index: {}]   ;;  %s2313_s2 = inlined_call_operand.vmem [shape: f32[1,128], index: 2, kind: input, shape index: {}]   ;;  %s2314_s3 = inlined_call_operand.vmem [shape: bf16[64,128], index: 3, kind: input, shape index: {}]   ;;  %s2315_s4 = inlined_call_operand.vmem [shape: bf16[128,64], index: 4, kind: input, shape index: {}]   ;;  %s2316_s5 = inlined_call_operand.vmem [shape: bf16[64,64], index: 5, kind: input, shape index: {}]   ;;  %s2317_s6 = inlined_call_operand.hbm [shape: bf16[64,64], index: 6, kind: input, shape index: {}]   ;;  %s2318_s7 = inlined_call_operand.hbm [shape: bf16[64,64], index: 7, kind: input, shape index: {}]   ;;  %s2319_s8 = inlined_call_operand.hbm [shape: f32[2,32,64], index: 8, kind: output, shape index: {0}]   ;;  %s2320_s9 = inlined_call_operand.hbm [shape: bf16[2,32,64], index: 9, kind: output, shape index: {1}]   ;;  %s2321_s10 = inlined_call_operand.hbm [shape: bf16[2,32,64], index: 10, kind: output, shape index: {2}]   ;;  %s2322_s11 = inlined_call_operand.hbm [shape: bf16[2,32,64], index: 11, kind: output, shape index: {3}]  }
   0x1   :  { %2334 = sst [smem:[#allocation28_spill]] %s2311_s0 }
   0x2   :  { %2335 = sst [smem:[#allocation29_spill]] %s2317_s6 }
   0x3   :  { %2336 = sst [smem:[#allocation30_spill]] %s2321_s10 }
   0x4   :  { %17 = vsyncpa [#allocation3], 0 }
   0x5   :  { %18 = vsyncpa [#allocation6], 0 }
   0x6   :  { %19 = vsyncpa [#allocation4], 0 }
   0x7   :  { %21 = vsyncpa [#allocation4 + $0x1], 0 }
   0x8   :  { %22 = vsyncpa [#allocation10], 0 }
   0x9   :  { %24 = vsyncpa [#allocation10 + $0x1], 0 }
   0xa   :  { %25 = vsyncpa [#allocation13], 0 }
   0xb   :  { %27 = vsyncpa [#allocation13 + $0x1], 0  ;;  %s1941_s17 = smov 0   ;;  %s1943_s18 = smov 0  }
   0xc   :  { %s1945_s19 = smov 0   ;;  %s1947_s20 = smov 0  }
   0xd   :  { %s1949_s21 = smov 0   ;;  %s1951_s22 = smov 0  }
   0xe   :  { %s1953_s23 = smov 0   ;;  %s1955_s24 = smov 0  }
   0xf LB: > { %2337 = sst [smem:[#allocation19_spill]] %s1841_s17  ;;  %s1982_s25 = sadd.s32 4294967295, %s1869_s24   ;;  %s1869_s24 = sphi %s1955_s24, %s33_s24   ;;  %s1865_s23 = sphi %s1953_s23, %s2364_s23   ;;  %s1861_s22 = sphi %s1951_s22, %s2363_s22   ;;  %s1857_s21 = sphi %s1949_s21, %s2362_s21   ;;  %s1853_s20 = sphi %s1947_s20, %s2361_s20   ;;  %s1849_s19 = sphi %s1945_s19, %s2367_s19   ;;  %s1845_s18 = sphi %s1943_s18, %s2366_s18   ;;  %s1841_s17 = sphi %s1941_s17, %s2365_s17  }
  0x10   : > { %2338 = sst [smem:[#allocation20_spill]] %s1849_s19  ;;  %s2323_s26 = sadd.s32 4294967294, %s1869_s24  }
  0x11   : > { %2339 = sst [smem:[#allocation21_spill]] %s1861_s22  ;;  %s42_s27 = sadd.s32 1, %s1861_s22 }
  0x12   : > { %2340 = sst [smem:[#allocation22_spill]] %s1865_s23  ;;  %s45_s28 = sadd.s32 1, %s1865_s23 }
  0x13   : > { %2341 = sst [smem:[#allocation23_spill]] %s1869_s24  ;;  %p43_p0 = scmp.ge.s32.totalorder %s42_s27, 2 }
  0x14   : > { %s229_s29 = sadd.s32 1, %s1849_s19  ;;  %p239_p1 = scmp.ne.s32.totalorder %s1849_s19, %s1845_s18 }
  0x15   : > { %p240_p2 = scmp.eq.s32.totalorder %s1982_s25, 3  ;;  %s2369_s27 = smov (%p43_p0, %s42_s27), 0 }
  0x16   : > { %2342 = sst [smem:[#allocation24_spill]] %s2369_s27  ;;  %s2371_s28 = smov (!%p43_p0, %s45_s28), %s1865_s23 }
  0x17   : > { %s225_s30 = ssub.s32 %s1861_s22, %s2369_s27  ;;  %p1996_p3 = por %p240_p2, %p239_p1 }
  0x18   : > { %p47_p4 = scmp.ge.s32.totalorder %s2371_s28, 2  ;;  %p245_p5 = scmp.ne.s32.totalorder %s1845_s18, %s1841_s17 }
  0x19   : > { %p246_p6 = scmp.eq.s32.totalorder %s2323_s26, 3  ;;  %p1270_p7 = scmp.ge.s32.totalorder %s1869_s24, 1 }
  0x1a   : > { %s2373_s28 = smov (%p47_p4, %s2371_s28), 0  ;;  %p337_p9 = scmp.lt.s32.totalorder %s1869_s24, 5 }
  0x1b   : > { %2344 = sst [smem:[#allocation25_spill]] %s2373_s28  ;;  %p2007_p8 = por %p246_p6, %p245_p5 }
  0x1c   : > { %s224_s14 = ssub.s32 %s1865_s23, %s2373_s28  ;;  %p2014_p10 = pnand %p1270_p7, %p337_p9 }
  0x1d   : > { %s2345_s13 = scalar_select %p2007_p8, 1, 0 }
  0x1e   : > { %s226_s15 = sor.u32 %s225_s30, %s224_s14  ;;  %p1477_p12 = scmp.eq.s32.totalorder %s1982_s25, 0 }
  0x1f   : > { %2346 = sst [smem:[#allocation26_spill]] %s2345_s13  ;;  %p227_p11 = scmp.eq.s32.totalorder %s226_s15, 0 }
  0x20   : > { %p1454_p13 = pneg %p2014_p10  ;;  %s2348_s6 = sld [smem:[#allocation29_spill]] }
  0x21   : > { %s2025_s17 = scalar_select %p227_p11, %s1849_s19, %s229_s29  }
  0x22   : > { %p2029_p0 = pnand %p1477_p12, %p1454_p13  ;;  %s1871_s30 = smov [#allocation5]  }
  0x23   : > { %2349 = sst [smem:[#allocation27_spill]] %s2025_s17  ;;  %s374_s14 = sshll.u32 %s1871_s30, 4  ;;  %s375_s14 = int_to_ptr.vmem [resolvable:$true] %s374_s14 }
  0x24   : > { %s1872_s15 = smov 64   ;;  %s1873_s28 = smov 4  }
  0x25   : > { %s349_s29 = sshll.u32 %s2312_s1, 4  ;;  %s386_s24 = sshll.u32 %s2318_s7, 4  ;;  %s350_s29 = int_to_ptr.hbm [resolvable:$true] %s349_s29  ;;  %s387_s24 = int_to_ptr.hbm [resolvable:$true] %s386_s24 }
  0x26   : > { %s372_s22 = sshll.u32 %s2348_s6, 4  ;;  %s1874_s6 = smov [#allocation2]   ;;  %s373_s22 = int_to_ptr.hbm [resolvable:$true] %s372_s22 }
  0x27   : > { %1460 = dma.hbm_to_vmem [thread:$0]  (!%p2029_p0), %s373_s22, 512, %s375_s14, [#allocation6], %s1872_s15, %s1872_s15, %s1873_s28  }
  0x28   : > { %s351_s23 = sshll.u32 %s1874_s6, 4  ;;  %s1875_s30 = smov [#allocation7]   ;;  %s352_s23 = int_to_ptr.vmem [resolvable:$true] %s351_s23 }
  0x29   : > { %1457 = dma.hbm_to_vmem [thread:$0]  (!%p2029_p0), %s350_s29, 128, %s352_s23, [#allocation3]  }
  0x2a   : > { %s388_s10 = sshll.u32 %s1875_s30, 4  ;;  %417 = sbr.rel (%p2014_p10) target bundleno = 1092 (0x444), region = 52  ;;  %s389_s10 = int_to_ptr.vmem [resolvable:$true] %s388_s10 }
  0x2b   : > { %1463 = dma.hbm_to_vmem [thread:$0]  (!%p2029_p0), %s387_s24, 512, %s389_s10, [#allocation6], %s1872_s15, %s1872_s15, %s1873_s28  }
  0x2f   : > { %1820 = dma.done.wait (%p1477_p12), [#allocation3], 128  }
  0x30   : > { %1822 = vsyncadd (%p1477_p12), [#allocation3], 4294967168 }
  0x31   : > { %1824 = dma.done.wait (%p1477_p12), [#allocation6], 1024  }
  0x32   : > { %1826 = vsyncadd (%p1477_p12), [#allocation6], 4294966272  ;;  %s2056_s6 = sshll.u32 %s1853_s20, 1  ;;  %p488_p1 = scmp.lt.s32.totalorder %s1857_s21, 1  ;;  %vm508_vm0 = vcmask 523264   ;;  %v1876_v5 = vmov 64.0  }
  0x33   : > { %p490_p2 = scmp.lt.s32.totalorder %s2056_s6, 3  ;;  %s2351_s0 = sld [smem:[#allocation28_spill]]  ;;  %1567 = vrcp.f32 %v1876_v5  ;;  %v1409_v22 = vld [vmem:[%s2314_s3 + $0x18] sm:$0xff]  ;;  %v1408_v23 = vld [vmem:[%s2314_s3 + $0x10] sm:$0xff]  ;;  %v1407_v24 = vld [vmem:[%s2314_s3 + $0x8] sm:$0xff] }
  0x34   : > { %s489_s10 = scalar_select %p488_p1, %s1857_s21, 1  ;;  %610 = vmatpush.bf16.msra.mxu0 %v1409_v22  ;;  %v1406_v26 = vld [vmem:[%s2314_s3] sm:$0xff]  ;;  %v1417_v55 = vld [vmem:[%s2315_s4 + $0x38] sm:$0xff]  ;;  %v1416_v56 = vld [vmem:[%s2315_s4 + $0x30] sm:$0xff] }
  0x35   : > { %s491_s17 = scalar_select %p490_p2, %s2056_s6, 3  ;;  %v1558_v45 = vld [vmem:[#allocation2] ss:$0 sm:$0xff]  ;;  %v1559_v50 = vld [vmem:[#allocation2 + $0x1] ss:$0 sm:$0xff]  ;;  %727 = vmatpush.bf16.msra.mxu1 %v1417_v55  ;;  %v1415_v57 = vld [vmem:[%s2315_s4 + $0x28] sm:$0xff] }
  0x36   : > { %s1284_s19 = sshll.u32 %s489_s10, 2  ;;  %v1414_v58 = vld [vmem:[%s2315_s4 + $0x20] sm:$0xff]  ;;  %v1413_v59 = vld [vmem:[%s2315_s4 + $0x18] sm:$0xff]  ;;  %v1412_v61 = vld [vmem:[%s2315_s4 + $0x10] sm:$0xff]  ;;  %s1393_s27 = sshll.u32 %s1857_s21, 2 }
  0x37   : > { %s493_s22 = sadd.s32 %s1284_s19, %s491_s17  ;;  %v1560_v60 = vld [vmem:[%s2313_s2] ss:$0 sm:$0xff]  ;;  %s2124_s19 = sand.u32 1, %s1845_s18   ;;  %v1421_v55 = vld [vmem:[%s2316_s5 + $0x18] sm:$0xff] }
  0x38   : > { %s1285_s23 = sshll.u32 %s493_s22, 2  ;;  %611 = vmatpush.bf16.msra.mxu0 %v1408_v23  ;;  %s1279_s22 = sshll.u32 %s2124_s19, 4  ;;  %841 = vmatpush.bf16.msra.mxu2 %v1421_v55 }
  0x39   : > { %s495_s13 = scalar_lea.vmem %s2351_s0, %s1285_s23  ;;  %v1568_v6 = vpop.eup %1567  ;;  %728 = vmatpush.bf16.msra.mxu1 %v1416_v56  ;;  %s2128_s23 = scalar_lea.vmem [#allocation8], %s1279_s22  ;;  %v1425_v56 = vld [vmem:[#allocation5 + $0x18] sm:$0xff] }
  0x3a   : > { %v1431_v0 = vld [vmem:[%s495_s13] sm:$0xff]   ;;  %v516_v7 = vmul.f32 64.0, %v1568_v6  ;;  %vm520_vm1 = vweird.f32 %v1568_v6  ;;  %894 = vmatpush.bf16.msra.mxu3 %v1425_v56  ;;  %s987_s29 = sadd.s32 %s1393_s27, %s2056_s6  ;;  %s990_s28 = sshll.u32 %s2128_s23, 4  ;;  %s991_s28 = int_to_ptr.vmem [resolvable:$true] %s990_s28 }
  0x3b   : > { %v2065_v1 = vunpack.c.l.bf16 %v1431_v0  ;;  %v2069_v3 = vunpack.c.h.bf16 %v1431_v0  ;;  %v1411_v0 = vld [vmem:[%s2315_s4 + $0x8] sm:$0xff]  ;;  %s1394_s30 = sshll.u32 %s987_s29, 3  ;;  %s961_s13 = scalar_lea.sflag [#allocation4], %s2124_s19 }
  0x3c   : > { %v517_v8 = vsub.f32 1.0, %v516_v7  ;;  %612 = vmatpush.bf16.msra.mxu0 %v1407_v24  ;;  %s989_s22 = scalar_lea.hbm %s2319_s8, %s1394_s30  ;;  %s1695_s6 = scalar_lea.hbm %s2319_s8, 64 }
  0x3d   : > { %v509_v2 = vsel %vm508_vm0, %v2065_v1, 0.0  ;;  %v512_v4 = vsel %vm508_vm0, %v2069_v3, 0.0  ;;  %729 = vmatpush.bf16.msra.mxu1 %v1415_v57  ;;  %v1429_v57 = vld [vmem:[#allocation7 + $0x18] sm:$0xff]  ;;  %s992_s24 = sshll.u32 %s989_s22, 4  ;;  %s993_s24 = int_to_ptr.hbm [resolvable:$true] %s992_s24 }
  0x3e   : > { %510 = vadd.xlane.f32.xlu0 %v509_v2  ;;  %v518_v9 = vmul.f32 %v1568_v6, %v517_v8  ;;  %s1689_s20 = sshra.s32 %s993_s24, 4  ;;  %s1690_s20 = int_to_ptr.hbm [resolvable:$true] %s1689_s20 }
  0x3f   : > { %s1691_s16 = scalar_lea.hbm %s1690_s20, 16  ;;  %p1696_p7 = scmp.lt.s32.totalorder %s1690_s20, %s2319_s8 }
  0x40   : > { %v519_v10 = vadd.f32 %v1568_v6, %v518_v9  ;;  %613 = vmatpush.bf16.msra.mxu0 %v1406_v26  ;;  %p1692_p4 = scmp.ne.s32.totalorder %s1690_s20, %s1691_s16  ;;  %p1697_p9 = scmp.lt.s32.totalorder %s1695_s6, %s1691_s16 }
  0x41   : > { %730 = vmatpush.bf16.msra.mxu1 %v1414_v58  ;;  %v1420_v58 = vld [vmem:[%s2316_s5 + $0x10] sm:$0xff] }
  0x42   : > { %v2073_v11 = vsel %vm520_vm1, %v1568_v6, %v519_v10  ;;  %842 = vmatpush.bf16.msra.mxu2 %v1420_v58  ;;  %p1693_p5 = pnand %p1692_p4, %p1996_p3  ;;  %p1698_p10 = por %p1697_p9, %p1696_p7 }
  0x44   : > { %946 = vmatpush.bf16.msrb.mxu0 %v1429_v57  ;;  %p1694_p6 = pneg %p1693_p5 }
  0x45   : > { %731 = vmatpush.bf16.msra.mxu1 %v1413_v59  ;;  %v1424_v59 = vld [vmem:[#allocation5 + $0x10] sm:$0xff] }
  0x46   : > { %513 = vadd.xlane.f32.xlu0 %v512_v4  ;;  %v1410_v4 = vld [vmem:[%s2315_s4] sm:$0xff]  ;;  %895 = vmatpush.bf16.msra.mxu3 %v1424_v59  ;;  %p1699_p11 = pnand %p1698_p10, %p1694_p6 }
  0x49   : > { %732 = vmatpush.bf16.msra.mxu1 %v1412_v61  ;;  %v1419_v61 = vld [vmem:[%s2316_s5 + $0x8] sm:$0xff] }
  0x4a   : > { %843 = vmatpush.bf16.msra.mxu2 %v1419_v61 }
  0x4d   : > { %733 = vmatpush.bf16.msra.mxu1 %v1411_v0 }
  0x51   : > { %734 = vmatpush.bf16.msra.mxu1 %v1410_v4  ;;  %v1422_v4 = vld [vmem:[#allocation5] sm:$0xff] }
  0xb1   : > { %v511_v12 = vpop.xlane.xlu0 %510 }
  0xb2   : > { %v522_v13 = vmul.f32 %v2073_v11, %v511_v12 }
  0xb4   : > { %v524_v14 = vsub.f32 %v2065_v1, %v522_v13 }
  0xb6   : > { %v526_v15 = vmul.f32 %v524_v14, %v524_v14 }
  0xb8   : > { %v528_v16 = vsel %vm508_vm0, %v526_v15, 0.0 }
  0xb9   : > { %529 = vadd.xlane.f32.xlu1 %v528_v16  ;;  %v514_v17 = vpop.xlane.xlu0 %513 }
  0xba   : > { %v523_v18 = vmul.f32 %v2073_v11, %v514_v17 }
  0xbc   : > { %v525_v19 = vsub.f32 %v2069_v3, %v523_v18 }
  0xbe   : > { %v527_v20 = vmul.f32 %v525_v19, %v525_v19 }
  0xc0   : > { %v531_v21 = vsel %vm508_vm0, %v527_v20, 0.0 }
  0xc1   : > { %532 = vadd.xlane.f32.xlu1 %v531_v21 }
 0x12c   : > { %v530_v25 = vpop.xlane.xlu1 %529 }
 0x12d   : > { %v534_v27 = vmul.f32 %v530_v25, %v2073_v11 }
 0x12f   : > { %v536_v28 = vadd.f32 1e-05, %v534_v27 }
 0x131   : > { %1569 = vrsqrt.f32 %v536_v28  ;;  %vm544_vm3 = vweird.f32 %v536_v28 }
 0x134   : > { %v533_v29 = vpop.xlane.xlu1 %532 }
 0x135   : > { %v535_v30 = vmul.f32 %v533_v29, %v2073_v11 }
 0x137   : > { %v1570_v31 = vpop.eup %1569  ;;  %v537_v32 = vadd.f32 1e-05, %v535_v30 }
 0x138   : > { %v539_v33 = vmul.f32 %v1570_v31, %v536_v28  ;;  %vm545_vm2 = vweird.f32 %v1570_v31 }
 0x139   : > { %1571 = vrsqrt.f32 %v537_v32  ;;  %vm546_vm4 = vmor %vm544_vm3, %vm545_vm2  ;;  %vm554_vm6 = vweird.f32 %v537_v32 }
 0x13a   : > { %v540_v34 = vmul.f32 %v1570_v31, %v539_v33 }
 0x13c   : > { %v541_v35 = vmul.f32 0.5, %v540_v34 }
 0x13e   : > { %v542_v36 = vsub.f32 1.5, %v541_v35 }
 0x13f   : > { %v1572_v37 = vpop.eup %1571 }
 0x140   : > { %v543_v38 = vmul.f32 %v1570_v31, %v542_v36  ;;  %v549_v39 = vmul.f32 %v1572_v37, %v537_v32  ;;  %vm555_vm5 = vweird.f32 %v1572_v37  ;;  %v1561_v36 = vld [vmem:[#allocation2 + $0x2] ss:$0 sm:$0xff] }
 0x141   : > { %vm556_vm7 = vmor %vm554_vm6, %vm555_vm5 }
 0x142   : > { %v550_v40 = vmul.f32 %v1572_v37, %v549_v39  ;;  %v547_v41 = vsel %vm546_vm4, %v1570_v31, %v543_v38 }
 0x143   : > { %v558_v44 = vmul.f32 %v547_v41, %v524_v14 }
 0x144   : > { %v551_v42 = vmul.f32 0.5, %v550_v40 }
 0x145   : > { %v561_v49 = vmul.f32 %v1558_v45, %v558_v44 }
 0x146   : > { %v552_v43 = vsub.f32 1.5, %v551_v42 }
 0x147   : > { %v564_v52 = vadd.f32 %v1559_v50, %v561_v49 }
 0x148   : > { %v553_v46 = vmul.f32 %v1572_v37, %v552_v43 }
 0x14a   : > { %v557_v47 = vsel %vm556_vm7, %v1572_v37, %v553_v46 }
 0x14b   : > { %v559_v48 = vmul.f32 %v557_v47, %v525_v19 }
 0x14d   : > { %v562_v51 = vmul.f32 %v1558_v45, %v559_v48 }
 0x14f   : > { %v565_v53 = vadd.f32 %v1559_v50, %v562_v51 }
 0x151   : > { %v567_v54 = vpack.c.bf16 %v565_v53, %v564_v52 }
 0x153   : > { %1302 = vmatmul.msk.bf16.vlgmr.msra.gmra.mxu0 %vm508_vm0, %v567_v54 }
 0x1d0   : > { %v615_v62 = vpop.f32.mrf.mxu0 }
 0x1d1   : > { %v616_v63 = vadd.f32 %v1560_v60, %v615_v62  ;;  %v1423_v62 = vld [vmem:[#allocation5 + $0x8] sm:$0xff] }
 0x1d2   : > { %896 = vmatpush.bf16.msra.mxu3 %v1423_v62 }
 0x1d3   : > { %v1303_v2 = vmul.f32 -1.442695, %v616_v63 }
 0x1d5   : > { %1573 = vpow2.f32 %v1303_v2  ;;  %v1418_v2 = vld [vmem:[%s2316_s5] sm:$0xff] }
 0x1d6   : > { %844 = vmatpush.bf16.msra.mxu2 %v1418_v2  ;;  %897 = vmatpush.bf16.msra.mxu3 %v1422_v4 }
 0x1d8   : > { %v617_v5 = vpop.f32.mrf.mxu0 }
 0x1d9   : > { %v618_v6 = vadd.f32 %v1560_v60, %v617_v5  ;;  %v1428_v60 = vld [vmem:[#allocation7 + $0x10] sm:$0xff] }
 0x1da   : > { %947 = vmatpush.bf16.msrb.mxu0 %v1428_v60 }
 0x1db   : > { %v1574_v7 = vpop.eup %1573  ;;  %v1304_v8 = vmul.f32 -1.442695, %v618_v6 }
 0x1dc   : > { %v626_v9 = vadd.f32 1.0, %v1574_v7 }
 0x1dd   : > { %1575 = vpow2.f32 %v1304_v8 }
 0x1de   : > { %1577 = vrcp.f32 %v626_v9  ;;  %v639_v20 = vand.u32 2147483648, %v626_v9  ;;  %vm633_vm9 = vweird.f32 %v626_v9  ;;  %v637_v21 = vand.u32 2147483647, %v626_v9 }
 0x1e0   : > { %v640_v27 = vor.u32 1.1754944e-38, %v639_v20  ;;  %vm638_vm12 = vcmp.eq.f32.partialorder %v637_v21, 8.507059e+37 }
 0x1e3   : > { %v1576_v10 = vpop.eup %1575 }
 0x1e4   : > { %v1578_v12 = vpop.eup %1577  ;;  %v627_v13 = vadd.f32 1.0, %v1576_v10 }
 0x1e5   : > { %v629_v14 = vmul.f32 %v1578_v12, %v626_v9  ;;  %vm634_vm8 = vweird.f32 %v1578_v12 }
 0x1e6   : > { %1579 = vrcp.f32 %v627_v13  ;;  %vm635_vm10 = vmor %vm633_vm9, %vm634_vm8  ;;  %v654_v23 = vand.u32 2147483648, %v627_v13  ;;  %v652_v26 = vand.u32 2147483647, %v627_v13  ;;  %vm648_vm13 = vweird.f32 %v627_v13 }
 0x1e7   : > { %v630_v15 = vsub.f32 1.0, %v629_v14 }
 0x1e8   : > { %v655_v30 = vor.u32 1.1754944e-38, %v654_v23  ;;  %vm653_vm15 = vcmp.eq.f32.partialorder %v652_v26, 8.507059e+37 }
 0x1e9   : > { %v631_v16 = vmul.f32 %v1578_v12, %v630_v15 }
 0x1eb   : > { %v632_v18 = vadd.f32 %v1578_v12, %v631_v16 }
 0x1ec   : > { %v1580_v17 = vpop.eup %1579 }
 0x1ed   : > { %v644_v19 = vmul.f32 %v1580_v17, %v627_v13  ;;  %v636_v24 = vsel %vm635_vm10, %v1578_v12, %v632_v18  ;;  %vm649_vm11 = vweird.f32 %v1580_v17 }
 0x1ee   : > { %v641_v29 = vsel %vm638_vm12, %v640_v27, %v636_v24  ;;  %vm650_vm14 = vmor %vm648_vm13, %vm649_vm11 }
 0x1ef   : > { %v645_v22 = vsub.f32 1.0, %v644_v19  ;;  %v658_v33 = vmul.f32 %v641_v29, %v616_v63  ;;  %v1427_v63 = vld [vmem:[#allocation7 + $0x8] sm:$0xff]  ;;  %v1563_v29 = vld [vmem:[#allocation2 + $0x4] ss:$0 sm:$0xff] }
 0x1f0   : > { %948 = vmatpush.bf16.msrb.mxu0 %v1427_v63 }
 0x1f1   : > { %v646_v25 = vmul.f32 %v1580_v17, %v645_v22 }
 0x1f3   : > { %v647_v28 = vadd.f32 %v1580_v17, %v646_v25 }
 0x1f5   : > { %v651_v31 = vsel %vm650_vm14, %v1580_v17, %v647_v28 }
 0x1f6   : > { %v656_v32 = vsel %vm653_vm15, %v655_v30, %v651_v31 }
 0x1f7   : > { %v659_v34 = vmul.f32 %v656_v32, %v618_v6  ;;  %v1426_v6 = vld [vmem:[#allocation7] sm:$0xff] }
 0x1f8   : > { %949 = vmatpush.bf16.msrb.mxu0 %v1426_v6 }
 0x1f9   : > { %v661_v35 = vpack.c.bf16 %v659_v34, %v658_v33 }
 0x1fb   : > { %735 = vmatmul.bf16.vlgmr.msra.gmra.mxu1 %v661_v35 }
 0x278   : > { %v736_v37 = vpop.f32.mrf.mxu1 }
 0x279   : > { %v737_v38 = vadd.f32 %v1561_v36, %v736_v37 }
 0x27b   : > { %v741_v39 = vmul.f32 0.5, %v737_v38 }
 0x27d   : > { %v743_v40 = vadd.f32 %v2065_v1, %v741_v39 }
 0x27f   : > { %745 = vst.msk [vmem:[%s2128_s23] sm:$0xff] %vm508_vm0, %v743_v40  ;;  %v749_v41 = vsel %vm508_vm0, %v743_v40, 0.0 }
 0x280   : > { %v738_v42 = vpop.f32.mrf.mxu1  ;;  %750 = vadd.xlane.f32.xlu2 %v749_v41 }
 0x281   : > { %v739_v43 = vadd.f32 %v1561_v36, %v738_v42 }
 0x283   : > { %v742_v44 = vmul.f32 0.5, %v739_v43 }
 0x285   : > { %v744_v45 = vadd.f32 %v2069_v3, %v742_v44 }
 0x287   : > { %746 = vst.msk [vmem:[%s2128_s23 + $0x8] sm:$0xff] %vm508_vm0, %v744_v45  ;;  %v752_v46 = vsel %vm508_vm0, %v744_v45, 0.0 }
 0x288   : > { %753 = vadd.xlane.f32.xlu2 %v752_v46 }
 0x2f3   : > { %v751_v1 = vpop.xlane.xlu2 %750 }
 0x2f4   : > { %v755_v47 = vmul.f32 %v751_v1, %v2073_v11 }
 0x2f6   : > { %v757_v48 = vsub.f32 %v743_v40, %v755_v47 }
 0x2f8   : > { %v759_v49 = vmul.f32 %v757_v48, %v757_v48 }
 0x2fa   : > { %v761_v50 = vsel %vm508_vm0, %v759_v49, 0.0 }
 0x2fb   : > { %762 = vadd.xlane.f32.xlu0 %v761_v50  ;;  %v754_v51 = vpop.xlane.xlu2 %753 }
 0x2fc   : > { %v756_v52 = vmul.f32 %v754_v51, %v2073_v11 }
 0x2fe   : > { %v758_v53 = vsub.f32 %v744_v45, %v756_v52 }
 0x300   : > { %v760_v54 = vmul.f32 %v758_v53, %v758_v53 }
 0x302   : > { %v764_v3 = vsel %vm508_vm0, %v760_v54, 0.0 }
 0x303   : > { %765 = vadd.xlane.f32.xlu1 %v764_v3 }
 0x36e   : > { %v763_v0 = vpop.xlane.xlu0 %762 }
 0x36f   : > { %v767_v5 = vmul.f32 %v763_v0, %v2073_v11 }
 0x371   : > { %v769_v7 = vadd.f32 1e-05, %v767_v5 }
 0x373   : > { %1581 = vrsqrt.f32 %v769_v7  ;;  %vm777_vm2 = vweird.f32 %v769_v7 }
 0x376   : > { %v766_v8 = vpop.xlane.xlu1 %765 }
 0x377   : > { %v768_v9 = vmul.f32 %v766_v8, %v2073_v11  ;;  %v1562_v11 = vld [vmem:[#allocation2 + $0x3] ss:$0 sm:$0xff] }
 0x379   : > { %v1582_v10 = vpop.eup %1581  ;;  %v770_v12 = vadd.f32 1e-05, %v768_v9 }
 0x37a   : > { %v772_v13 = vmul.f32 %v1582_v10, %v769_v7  ;;  %vm778_vm1 = vweird.f32 %v1582_v10 }
 0x37b   : > { %1583 = vrsqrt.f32 %v770_v12  ;;  %vm779_vm3 = vmor %vm777_vm2, %vm778_vm1  ;;  %vm787_vm5 = vweird.f32 %v770_v12 }
 0x37c   : > { %v773_v14 = vmul.f32 %v1582_v10, %v772_v13 }
 0x37e   : > { %v774_v15 = vmul.f32 0.5, %v773_v14 }
 0x380   : > { %v775_v16 = vsub.f32 1.5, %v774_v15 }
 0x381   : > { %v1584_v17 = vpop.eup %1583 }
 0x382   : > { %v776_v18 = vmul.f32 %v1582_v10, %v775_v16  ;;  %v782_v19 = vmul.f32 %v1584_v17, %v770_v12  ;;  %vm788_vm4 = vweird.f32 %v1584_v17 }
 0x383   : > { %vm789_vm6 = vmor %vm787_vm5, %vm788_vm4 }
 0x384   : > { %v783_v20 = vmul.f32 %v1584_v17, %v782_v19  ;;  %v780_v21 = vsel %vm779_vm3, %v1582_v10, %v776_v18 }
 0x385   : > { %v791_v24 = vmul.f32 %v780_v21, %v757_v48 }
 0x386   : > { %v784_v22 = vmul.f32 0.5, %v783_v20 }
 0x387   : > { %v794_v28 = vmul.f32 %v1562_v11, %v791_v24 }
 0x388   : > { %v785_v23 = vsub.f32 1.5, %v784_v22 }
 0x389   : > { %v797_v31 = vadd.f32 %v1563_v29, %v794_v28 }
 0x38a   : > { %v786_v25 = vmul.f32 %v1584_v17, %v785_v23 }
 0x38c   : > { %v790_v26 = vsel %vm789_vm6, %v1584_v17, %v786_v25 }
 0x38d   : > { %v792_v27 = vmul.f32 %v790_v26, %v758_v53 }
 0x38f   : > { %v795_v30 = vmul.f32 %v1562_v11, %v792_v27 }
 0x391   : > { %v798_v32 = vadd.f32 %v1563_v29, %v795_v30 }
 0x393   : > { %v799_v33 = vpack.c.bf16 %v798_v32, %v797_v31 }
 0x395   : > { %1353 = vmatmul.msk.bf16.vlgmr.msra.gmra.mxu2 %vm508_vm0, %v799_v33  ;;  %1370 = vmatmul.msk.bf16.vlgmr.msra.gmra.mxu3 %vm508_vm0, %v799_v33 }
 0x396   : > { %1387 = vmatmul.msk.bf16.vlgmr.msrb.gmra.mxu0 %vm508_vm0, %v799_v33 }
 0x397   : > { %1702 = shalt.err (!%p1699_p11)
}
 0x398   : > { %s1877_s23 = smov 128   ;;  %s1878_s27 = smov 8   ;;  %v1564_v34 = vld [vmem:[#allocation2 + $0x7] ss:$0 sm:$0xff]  ;;  %vm853_vm0 = vcmask 519168  }
 0x399   : > { %1446 = dma.vmem_to_hbm [thread:$0]  (%p1996_p3), %s991_s28, 256, %s993_s24, %s961_s13, %s1877_s23, %s1877_s23, %s1878_s27   ;;  %v1565_v37 = vld [vmem:[#allocation2 + $0x5] ss:$0 sm:$0xff]  ;;  %v1566_v38 = vld [vmem:[#allocation2 + $0x6] ss:$0 sm:$0xff] }
 0x39a   : > { %s1280_s30 = sshll.u32 %s2124_s19, 3  ;;  %s2176_s10 = sshll.u32 %s987_s29, 2 }
 0x39b   : > { %s486_s17 = scalar_lea.vmem [#allocation12], %s1280_s30  ;;  %s1046_s24 = scalar_lea.hbm %s2322_s11, %s2176_s10 }
 0x39c   : > { %s1047_s29 = sshll.u32 %s486_s17, 4  ;;  %s2183_s28 = sshll.u32 %s1046_s24, 4  ;;  %s2197_s29 = int_to_ptr.vmem [resolvable:$true] %s1047_s29  ;;  %s1050_s28 = int_to_ptr.hbm [resolvable:$true] %s2183_s28 }
 0x39d   : > { %s1008_s14 = scalar_lea.hbm %s2320_s9, %s2176_s10  ;;  %s2189_s21 = scalar_lea.vmem [#allocation9], %s1280_s30 }
 0x39e   : > { %s2193_s6 = scalar_lea.vmem [#allocation11], %s1280_s30  ;;  %s2352_s23 = sld [smem:[#allocation30_spill]] }
 0x39f   : > { %s1009_s20 = sshll.u32 %s2189_s21, 4  ;;  %s965_s24 = sand.u32 1, %s1982_s25   ;;  %s1010_s20 = int_to_ptr.vmem [resolvable:$true] %s1009_s20 }
 0x3a0   : > { %s2207_s30 = sshll.u32 %s1008_s14, 4  ;;  %s976_s13 = scalar_lea.sflag [#allocation13], %s2124_s19  ;;  %s1012_s30 = int_to_ptr.hbm [resolvable:$true] %s2207_s30 }
 0x3a1   : > { %s1717_s16 = sshra.s32 %s1050_s28, 4  ;;  %s1718_s16 = int_to_ptr.hbm [resolvable:$true] %s1717_s16 }
 0x3a2   : > { %s1719_s0 = scalar_lea.hbm %s1718_s16, 8  ;;  %p1724_p1 = scmp.lt.s32.totalorder %s1718_s16, %s2322_s11 }
 0x3a3   : > { %p1720_p12 = scmp.ne.s32.totalorder %s1718_s16, %s1719_s0 }
 0x3a4   : > { %s2353_s27 = smov %s2352_s23 }
 0x3a5   : > { %p1721_p13 = pnand %p1720_p12, %p1996_p3 }
 0x3a7   : > { %p1722_p0 = pneg %p1721_p13 }
 0x413   : > { %v951_v35 = vpop.f32.mrf.mxu0 }
 0x414   : > { %v952_v36 = vadd.f32 %v1564_v34, %v951_v35 }
 0x416   : > { %v956_v39 = vpack.c.bf16 %v952_v36, %v952_v36 }
 0x418   : > { %958 = vst.msk [vmem:[%s486_s17] sm:$0xf] %vm853_vm0, %v956_v39  ;;  %v846_v40 = vpop.f32.mrf.mxu2  ;;  %v899_v41 = vpop.f32.mrf.mxu3 }
 0x419   : > { %v847_v42 = vadd.f32 %v1565_v37, %v846_v40  ;;  %v900_v43 = vadd.f32 %v1566_v38, %v899_v41 }
 0x41b   : > { %v851_v44 = vpack.c.bf16 %v847_v42, %v847_v42  ;;  %v904_v45 = vpack.c.bf16 %v900_v43, %v900_v43  ;;  %v953_v46 = vpop.f32.mrf.mxu0 }
 0x41c   : > { %v954_v1 = vadd.f32 %v1564_v34, %v953_v46 }
 0x41d   : > { %854 = vst.msk [vmem:[%s2189_s21] sm:$0xf] %vm853_vm0, %v851_v44 }
 0x41e   : > { %906 = vst.msk [vmem:[%s2193_s6] sm:$0xf] %vm853_vm0, %v904_v45  ;;  %v957_v47 = vpack.c.bf16 %v954_v1, %v954_v1 }
 0x420   : > { %959 = vst.msk [vmem:[%s486_s17 + $0x4] sm:$0xf] %vm853_vm0, %v957_v47  ;;  %v848_v48 = vpop.f32.mrf.mxu2  ;;  %v901_v49 = vpop.f32.mrf.mxu3  ;;  %s1723_s17 = scalar_lea.hbm %s2322_s11, 32 }
 0x421   : > { %v849_v50 = vadd.f32 %v1565_v37, %v848_v48  ;;  %v902_v51 = vadd.f32 %v1566_v38, %v901_v49  ;;  %p1725_p2 = scmp.lt.s32.totalorder %s1723_s17, %s1719_s0 }
 0x423   : > { %p1726_p4 = por %p1725_p2, %p1724_p1 }
 0x425   : > { %p1727_p5 = pnand %p1726_p4, %p1722_p0 }
 0x427   : > { %1730 = shalt.err (!%p1727_p5)
}
 0x428   : > { %s1879_s19 = smov 64   ;;  %s1880_s14 = smov 4   ;;  %v852_v52 = vpack.c.bf16 %v849_v50, %v849_v50  ;;  %v905_v53 = vpack.c.bf16 %v902_v51, %v902_v51 }
 0x429   : > { %1449 = dma.vmem_to_hbm [thread:$0]  (%p1996_p3), %s2197_s29, 128, %s1050_s28, %s976_s13, %s1879_s19, %s1879_s19, %s1880_s14  }
 0x42a   : > { %s2354_s16 = scalar_lea.hbm %s2353_s27, %s2176_s10  ;;  %s1028_s26 = sshll.u32 %s2193_s6, 4  ;;  %855 = vst.msk [vmem:[%s2189_s21 + $0x4] sm:$0xf] %vm853_vm0, %v852_v52  ;;  %s2238_s26 = int_to_ptr.vmem [resolvable:$true] %s1028_s26 }
 0x42b   : > { %s2233_s15 = sshll.u32 %s2354_s16, 4  ;;  %907 = vst.msk [vmem:[%s2193_s6 + $0x4] sm:$0xf] %vm853_vm0, %v905_v53  ;;  %s2246_s29 = scalar_lea.sflag [#allocation10], %s965_s24  ;;  %s1031_s15 = int_to_ptr.hbm [resolvable:$true] %s2233_s15 }
 0x42c   : > { %s1745_s10 = sshra.s32 %s1012_s30, 4  ;;  %s1751_s23 = scalar_lea.hbm %s2320_s9, 32  ;;  %s1746_s10 = int_to_ptr.hbm [resolvable:$true] %s1745_s10 }
 0x42d   : > { %s1747_s28 = scalar_lea.hbm %s1746_s10, 8  ;;  %p1752_p10 = scmp.lt.s32.totalorder %s1746_s10, %s2320_s9 }
 0x42e   : > { %p1748_p6 = scmp.ne.s32.totalorder %s1746_s10, %s1747_s28  ;;  %p1753_p11 = scmp.lt.s32.totalorder %s1751_s23, %s1747_s28 }
 0x430   : > { %p1749_p7 = pnand %p1748_p6, %p1996_p3  ;;  %p1754_p12 = por %p1753_p11, %p1752_p10 }
 0x432   : > { %p1750_p9 = pneg %p1749_p7 }
 0x434   : > { %p1755_p13 = pnand %p1754_p12, %p1750_p9 }
 0x436   : > { %1758 = shalt.err (!%p1755_p13)
}
 0x437   : > { %1447 = dma.vmem_to_hbm [thread:$0]  (%p1996_p3), %s1010_s20, 128, %s1012_s30, %s2246_s29, %s1879_s19, %s1879_s19, %s1880_s14  }
 0x438   : > { %s1773_s25 = sshra.s32 %s1031_s15, 4  ;;  %s1779_s16 = scalar_lea.hbm %s2353_s27, 32  ;;  %s1774_s25 = int_to_ptr.hbm [resolvable:$true] %s1773_s25 }
 0x439   : > { %s1775_s21 = scalar_lea.hbm %s1774_s25, 8  ;;  %p1780_p4 = scmp.lt.s32.totalorder %s1774_s25, %s2353_s27 }
 0x43a   : > { %p1776_p0 = scmp.ne.s32.totalorder %s1774_s25, %s1775_s21  ;;  %p1781_p5 = scmp.lt.s32.totalorder %s1779_s16, %s1775_s21 }
 0x43c   : > { %p1777_p1 = pnand %p1776_p0, %p1996_p3  ;;  %p1782_p6 = por %p1781_p5, %p1780_p4 }
 0x43e   : > { %p1778_p2 = pneg %p1777_p1 }
 0x440   : > { %p1783_p7 = pnand %p1782_p6, %p1778_p2 }
 0x442   : > { %1786 = shalt.err (!%p1783_p7)
}
 0x443   : > { %1448 = dma.vmem_to_hbm [thread:$0]  (%p1996_p3), %s2238_s26, 128, %s1031_s15, %s2246_s29, %s1879_s19, %s1879_s19, %s1880_s14  }
 0x444 PF: > { %s2355_s20 = sld [smem:[#allocation23_spill]] }
 0x445   : > { %s2356_s30 = sld [smem:[#allocation19_spill]] }
 0x44a   : > { %p1483_p9 = scmp.ge.s32.totalorder %s2355_s20, 2 }
 0x44b   : > { %s1064_s17 = sand.u32 1, %s2356_s30  }
 0x44c   : > { %p1465_p10 = pnand %p1483_p9, %p2007_p8  ;;  %s1065_s23 = scalar_lea.sflag [#allocation4], %s1064_s17 }
 0x44e   : > { %p1466_p11 = pneg %p1465_p10 }
 0x450   : > { %1828 = dma.done.wait (%p1466_p11), %s1065_s23, 256  }
 0x451   : > { %1830 = vsyncadd (%p1466_p11), %s1065_s23, 4294967040  ;;  %s2358_s12 = sadd.s32 4294967294, %s2355_s20  }
 0x452   : > { %s1074_s0 = sand.u32 1, %s2358_s12  }
 0x453   : > { %s1075_s22 = scalar_lea.sflag [#allocation10], %s1074_s0 }
 0x454   : > { %1832 = dma.done.wait (%p1466_p11), %s1075_s22, 256  }
 0x455   : > { %1834 = vsyncadd (%p1466_p11), %s1075_s22, 4294967040  ;;  %s1095_s25 = scalar_lea.sflag [#allocation13], %s1064_s17 }
 0x456   : > { %1836 = dma.done.wait (%p1466_p11), %s1095_s25, 128  }
 0x457   : > { %1838 = vsyncadd (%p1466_p11), %s1095_s25, 4294967168  ;;  %s33_s24 = sadd.s32 1, %s2355_s20   ;;  %s2359_s19 = sld [smem:[#allocation20_spill]] }
 0x458   : > { %p30_p3 = scmp.ge.s32.totalorder %s33_s24, 6   ;;  %s2360_s14 = sld [smem:[#allocation27_spill]] }
 0x459   : > { %s2361_s20 = sld [smem:[#allocation21_spill]]  ;;  %s2365_s17 = smov %s1845_s18 }
 0x45a   : > { %s2362_s21 = sld [smem:[#allocation22_spill]]  ;;  %32 = sbr.rel (!%p30_p3) target bundleno = 15 (0xf), region = 149 }
 0x45b   : > { %s2363_s22 = sld [smem:[#allocation24_spill]] }
 0x45c   : > { %s2364_s23 = sld [smem:[#allocation25_spill]] }
 0x45d   : > { %s2366_s18 = smov %s2359_s19 }
 0x45e   : > { %s2367_s19 = smov %s2360_s14 }
 0x45f   :  { %1101 = vsyncpa [#allocation3], 1 }
 0x460   :  { %1103 = vsyncpa [#allocation3 + $0x1], 1 }
 0x461   :  { %1104 = vsyncpa [#allocation6], 1 }
 0x462   :  { %1105 = vsyncpa [#allocation4], 1 }
 0x463   :  { %1107 = vsyncpa [#allocation4 + $0x1], 1 }
 0x464   :  { %1108 = vsyncpa [#allocation10], 1 }
 0x465   :  { %1110 = vsyncpa [#allocation10 + $0x1], 1 }
 0x466   :  { %1111 = vsyncpa [#allocation13], 1 }
 0x467   :  { %1113 = vsyncpa [#allocation13 + $0x1], 1 }

</bundles_post_ra>
